<compile_context>
chip_gen: v7x
topology: tpu7x:2x2x1
jax: 0.10.0
libtpu: 0.0.40
codegen_flags: <defaults>
</compile_context>

<pallas_src>
import jax
import jax.numpy as jnp
from jax import lax
from jax.experimental import pallas as pl
from jax.experimental.pallas import tpu as pltpu

_LANE = 128
_TARGET_WIDTH = 2048            # aim for at least this many lanes per grid step
_MAX_SLAB_BYTES = 8 * 1024 * 1024


def _round_up(a, m):
    return (a + m - 1) // m * m


def _make_kernel(KK, C2, WIDTH, OFF, deltas):
    """Per-grid-step kernel over NB flattened padded planes (width WIDTH)."""
    f32 = jnp.float32

    def kernel(x_ref, w1_ref, w2_ref, w3_ref, t1_ref, t2_ref, b3_ref, m_ref,
               out_ref, slab):
        x = x_ref[...]                          # (1, WIDTH) flat padded planes
        valid = m_ref[...] > 0.5                # (1, WIDTH) interior mask

        # ---- conv1 (1 -> C2): K*K shifted copies of x, one fused contraction
        for t, d in enumerate(deltas):
            c0 = OFF - d                        # static lane offset per tap
            slab[t:t + 1, c0:c0 + WIDTH] = x
        h = jnp.dot(w1_ref[...], slab[0:KK, OFF:OFF + WIDTH],
                    preferred_element_type=f32)
        # folded bn1 shift + ReLU; mask enforces zero padding for conv2 and
        # kills any stale-scratch garbage at non-interior positions.
        h = jnp.where(valid, jnp.maximum(h + t1_ref[...], 0.0), 0.0)

        # ---- conv2 (C2 -> C2): im2col slab + ONE (C2,KK*C2)x(KK*C2,WIDTH) MXU
        for t, d in enumerate(deltas):
            c0 = OFF - d
            slab[t * C2:(t + 1) * C2, c0:c0 + WIDTH] = h
        h = jnp.dot(w2_ref[...], slab[:, OFF:OFF + WIDTH],
                    preferred_element_type=f32)
        h = jnp.where(valid, jnp.maximum(h + t2_ref[...], 0.0), 0.0)

        # ---- conv3 (C2 -> 1, bias): reuse the slab scratch, single matmul row
        for t, d in enumerate(deltas):
            c0 = OFF - d
            slab[t * C2:(t + 1) * C2, c0:c0 + WIDTH] = h
        y = jnp.dot(w3_ref[...], slab[:, OFF:OFF + WIDTH],
                    preferred_element_type=f32) + b3_ref[0]

        out_ref[...] = x + y                    # residual add on the raw input

    return kernel


def refineblock_forward(x, params, *, planes_per_step=None):
    """x: (N, 1, H, W) float32 NCHW.  Returns x2 = x + refine(x) (eval-mode BN)."""
    f32 = jnp.float32
    N, cin, H, W = x.shape
    assert cin == 1
    C2, _, K, _ = params["w1"].shape
    P = (K - 1) // 2
    KK = K * K
    Hp, Wp = H + 2 * P, W + 2 * P
    L = Hp * Wp
    Lpad = _round_up(L, _LANE)
    DMAX = P * Wp + P                     # largest |flat tap shift|
    OFF = _round_up(DMAX, _LANE)          # 128-aligned read window start

    # ---- planes per grid step (lane-dense packing of small planes) ----
    if planes_per_step is None:
        NB = max(1, min(N, _TARGET_WIDTH // Lpad)) if Lpad < _TARGET_WIDTH else 1
    else:
        NB = max(1, min(N, planes_per_step))

    def _slab_bytes(nb):
        return KK * C2 * _round_up(OFF + nb * Lpad + DMAX, _LANE) * 4

    while NB > 1 and _slab_bytes(NB) > _MAX_SLAB_BYTES:
        NB -= 1
    Ng = (N + NB - 1) // NB
    Npad = Ng * NB
    WIDTH = NB * Lpad
    Ls = _round_up(OFF + WIDTH + DMAX, _LANE)

    # ---- flat, padded, lane-dense input layout (zero halo via wrapper pad) --
    xp = jnp.pad(x[:, 0].astype(f32),
                 ((0, Npad - N), (P, P), (P, P)))             # (Npad, Hp, Wp)
    xg = jnp.pad(xp.reshape(Npad, L),
                 ((0, 0), (0, Lpad - L))).reshape(Ng, WIDTH)  # (Ng, WIDTH)

    # ---- interior mask: 1 at valid output positions of each packed plane ----
    rows = jnp.arange(Hp)
    cols = jnp.arange(Wp)
    m2 = ((rows >= P) & (rows < P + H))[:, None] & \
         ((cols >= P) & (cols < P + W))[None, :]
    mask = jnp.pad(m2.astype(f32).reshape(L), (0, Lpad - L))
    mask = jnp.tile(mask, NB)[None, :]                        # (1, WIDTH)

    # ---- fold eval-mode BN scale into conv weights; keep only the shift -----
    eps = 1e-5
    s1 = params["bn1_gamma"] / jnp.sqrt(params["bn1_var"] + eps)
    t1 = params["bn1_beta"] - params["bn1_mean"] * s1
    s2 = params["bn2_gamma"] / jnp.sqrt(params["bn2_var"] + eps)
    t2 = params["bn2_beta"] - params["bn2_mean"] * s2

    # Matmul-ready weights; column order (t*C2 + ci) matches the slab rows.
    w1mat = (params["w1"][:, 0] * s1[:, None, None]).reshape(C2, KK).astype(f32)
    w2mat = jnp.transpose(params["w2"] * s2[:, None, None, None],
                          (0, 2, 3, 1)).reshape(C2, KK * C2).astype(f32)
    w3mat = jnp.transpose(params["w3"], (0, 2, 3, 1)).reshape(1, KK * C2).astype(f32)
    t1v = t1.astype(f32)[:, None]                              # (C2, 1)
    t2v = t2.astype(f32)[:, None]
    b3v = params["b3"].reshape(1).astype(f32)

    # Flat-index shift per tap (t = i*K + j, matching the weight repacking).
    deltas = tuple((i - P) * Wp + (j - P) for i in range(K) for j in range(K))
    kern = _make_kernel(KK, C2, WIDTH, OFF, deltas)

    # VMEM budget: slab + double-buffered I/O blocks + weights/mask, 2x headroom.
    vmem_bytes = (KK * C2 * Ls + 4 * WIDTH + 2 * WIDTH
                  + 2 * (C2 * KK + C2 * KK * C2 + KK * C2 + 2 * C2)) * 4
    vmem_limit = int(min(100 * 2 ** 20, max(32 * 2 ** 20, 2 * vmem_bytes)))

    out = pl.pallas_call(
        kern,
        out_shape=jax.ShapeDtypeStruct((Ng, WIDTH), f32),
        grid=(Ng,),
        in_specs=[
            pl.BlockSpec((1, WIDTH), lambda n: (n, 0)),         # x (flat, padded)
            pl.BlockSpec((C2, KK), lambda n: (0, 0)),           # conv1 weights
            pl.BlockSpec((C2, KK * C2), lambda n: (0, 0)),      # conv2 weights
            pl.BlockSpec((1, KK * C2), lambda n: (0, 0)),       # conv3 weights
            pl.BlockSpec((C2, 1), lambda n: (0, 0)),            # bn1 shift
            pl.BlockSpec((C2, 1), lambda n: (0, 0)),            # bn2 shift
            pl.BlockSpec(memory_space=pltpu.MemorySpace.SMEM),  # conv3 bias
            pl.BlockSpec((1, WIDTH), lambda n: (0, 0)),         # interior mask
        ],
        out_specs=pl.BlockSpec((1, WIDTH), lambda n: (n, 0)),
        scratch_shapes=[pltpu.VMEM((KK * C2, Ls), f32)],        # im2col slab
        compiler_params=pltpu.CompilerParams(
            dimension_semantics=("parallel",),
            vmem_limit_bytes=vmem_limit,
        ),
    )(xg, w1mat, w2mat, w3mat, t1v, t2v, b3v, mask)

    # Back to NCHW: drop lane padding, drop halo, drop batch padding.
    out_img = (out.reshape(Npad, Lpad)[:N, :L]
               .reshape(N, Hp, Wp)[:, P:P + H, P:P + W])
    return out_img[:, None, :, :]


def reference_forward(x, params):
    """Pure-JAX reference (eval-mode BN), NCHW / OIHW like PyTorch."""
    eps = 1e-5
    K = params["w1"].shape[-1]
    P = (K - 1) // 2

    def conv(h, w):
        return lax.conv_general_dilated(
            h, w, (1, 1), [(P, P), (P, P)],
            dimension_numbers=("NCHW", "OIHW", "NCHW"))

    def bn(h, g, b, m, v):
        g = g[None, :, None, None]; b = b[None, :, None, None]
        m = m[None, :, None, None]; v = v[None, :, None, None]
        return (h - m) / jnp.sqrt(v + eps) * g + b

    h = conv(x, params["w1"])
    h = jnp.maximum(bn(h, params["bn1_gamma"], params["bn1_beta"],
                       params["bn1_mean"], params["bn1_var"]), 0.0)
    h = conv(h, params["w2"])
    h = jnp.maximum(bn(h, params["bn2_gamma"], params["bn2_beta"],
                       params["bn2_mean"], params["bn2_var"]), 0.0)
    h = conv(h, params["w3"]) + params["b3"][None, :, None, None]
    return x + h


def init_params(key, num_features, kernel_size):
    C2, K = num_features // 2, kernel_size
    ks = jax.random.split(key, 12)
    f32 = jnp.float32
    return {
        "w1": (0.3 * jax.random.normal(ks[0], (C2, 1, K, K))).astype(f32),
        "w2": (0.3 * jax.random.normal(ks[1], (C2, C2, K, K))).astype(f32),
        "w3": (0.3 * jax.random.normal(ks[2], (1, C2, K, K))).astype(f32),
        "b3": (0.1 * jax.random.normal(ks[3], (1,))).astype(f32),
        "bn1_gamma": (1.0 + 0.1 * jax.random.normal(ks[4], (C2,))).astype(f32),
        "bn1_beta": (0.1 * jax.random.normal(ks[5], (C2,))).astype(f32),
        "bn1_mean": (0.1 * jax.random.normal(ks[6], (C2,))).astype(f32),
        "bn1_var": (0.5 + 0.5 * jnp.abs(jax.random.normal(ks[7], (C2,)))).astype(f32),
        "bn2_gamma": (1.0 + 0.1 * jax.random.normal(ks[8], (C2,))).astype(f32),
        "bn2_beta": (0.1 * jax.random.normal(ks[9], (C2,))).astype(f32),
        "bn2_mean": (0.1 * jax.random.normal(ks[10], (C2,))).astype(f32),
        "bn2_var": (0.5 + 0.5 * jnp.abs(jax.random.normal(ks[11], (C2,)))).astype(f32),
    }


if __name__ == "__main__":
    key = jax.random.PRNGKey(0)
    configs = [
        # (num_features, kernel_size, N, H, W)
        (4, 3, 2, 16, 16),    # tiny C2=2 case (original test shape)
        (64, 3, 2, 16, 16),   # C2=32 -> KK*C2=288 wide MXU contraction
        (8, 5, 2, 16, 16),    # larger kernel / wider halo
        (4, 1, 2, 16, 16),    # K=1 edge case (P=0, no halo)
    ]
    for idx, (nf, ks_, N, H, W) in enumerate(configs):
        k_x, k_p, key = jax.random.split(key, 3)
        x = jax.random.normal(k_x, (N, 1, H, W), dtype=jnp.float32)
        params = init_params(k_p, nf, ks_)

        out = jax.block_until_ready(refineblock_forward(x, params))
        ref = jax.block_until_ready(reference_forward(x, params))

        assert out.shape == (N, 1, H, W), (idx, out.shape)
        max_err = float(jnp.max(jnp.abs(out - ref)))
        assert jnp.allclose(out, ref, rtol=1e-4, atol=1e-4), (idx, max_err)

    print("KERNEL_OK")
</pallas_src>

<mosaic_0001>
module attributes {stable_mosaic.version = 11 : i64} {
  func.func @kernel(%arg0: i32, %arg1: memref<1x768xf32, #tpu.memory_space<vmem>>, %arg2: memref<2x9xf32, #tpu.memory_space<vmem>>, %arg3: memref<2x18xf32, #tpu.memory_space<vmem>>, %arg4: memref<1x18xf32, #tpu.memory_space<vmem>>, %arg5: memref<2x1xf32, #tpu.memory_space<vmem>>, %arg6: memref<2x1xf32, #tpu.memory_space<vmem>>, %arg7: memref<1xf32, #tpu.memory_space<smem>>, %arg8: memref<1x768xf32, #tpu.memory_space<vmem>>, %arg9: memref<1x768xf32, #tpu.memory_space<vmem>>, %arg10: memref<18x1024xf32, #tpu.memory_space<vmem>>) attributes {dimension_semantics = [#tpu.dimension_semantics<parallel>], iteration_bounds = array<i64: 1>, scalar_prefetch = 0 : i64, scratch_operands = 1 : i64, tpu.core_type = #tpu.core_type<tc>, window_params = [{transform_indices = @transform_0, window_bounds = array<i64: 1, 768>}, {pipeline_mode = #tpu.pipeline_mode<synchronous>, transform_indices = @transform_1, window_bounds = array<i64: 2, 9>}, {pipeline_mode = #tpu.pipeline_mode<synchronous>, transform_indices = @transform_2, window_bounds = array<i64: 2, 18>}, {pipeline_mode = #tpu.pipeline_mode<synchronous>, transform_indices = @transform_3, window_bounds = array<i64: 1, 18>}, {pipeline_mode = #tpu.pipeline_mode<synchronous>, transform_indices = @transform_4, window_bounds = array<i64: 2, 1>}, {pipeline_mode = #tpu.pipeline_mode<synchronous>, transform_indices = @transform_5, window_bounds = array<i64: 2, 1>}, {transform_indices = @transform_6, window_bounds = array<i64: 1>}, {pipeline_mode = #tpu.pipeline_mode<synchronous>, transform_indices = @transform_7, window_bounds = array<i64: 1, 768>}, {transform_indices = @transform_8, window_bounds = array<i64: 1, 768>}]} {
    %c0 = arith.constant 0 : index
    %c0_0 = arith.constant 0 : index
    %0 = vector.load %arg1[%c0, %c0_0] : memref<1x768xf32, #tpu.memory_space<vmem>>, vector<1x768xf32>
    %c0_1 = arith.constant 0 : index
    %c0_2 = arith.constant 0 : index
    %1 = vector.load %arg8[%c0_1, %c0_2] : memref<1x768xf32, #tpu.memory_space<vmem>>, vector<1x768xf32>
    %cst = arith.constant 5.000000e-01 : f32
    %2 = vector.broadcast %cst : f32 to vector<1x768xf32>
    %3 = arith.cmpf ogt, %1, %2 : vector<1x768xf32>
    %c0_3 = arith.constant 0 : index
    %c147 = arith.constant 147 : index
    %4 = vector.load %arg10[%c0_3, %c147] : memref<18x1024xf32, #tpu.memory_space<vmem>>, vector<1x768xf32>
    tpu.vector_store %arg10[%c0_3, %c147], %0 {strides = array<i32>} : memref<18x1024xf32, #tpu.memory_space<vmem>>, vector<1x768xf32>,
    %c1 = arith.constant 1 : index
    %c146 = arith.constant 146 : index
    %5 = vector.load %arg10[%c1, %c146] : memref<18x1024xf32, #tpu.memory_space<vmem>>, vector<1x768xf32>
    tpu.vector_store %arg10[%c1, %c146], %0 {strides = array<i32>} : memref<18x1024xf32, #tpu.memory_space<vmem>>, vector<1x768xf32>,
    %c2 = arith.constant 2 : index
    %c145 = arith.constant 145 : index
    %6 = vector.load %arg10[%c2, %c145] : memref<18x1024xf32, #tpu.memory_space<vmem>>, vector<1x768xf32>
    tpu.vector_store %arg10[%c2, %c145], %0 {strides = array<i32>} : memref<18x1024xf32, #tpu.memory_space<vmem>>, vector<1x768xf32>,
    %c3 = arith.constant 3 : index
    %c129 = arith.constant 129 : index
    %7 = vector.load %arg10[%c3, %c129] : memref<18x1024xf32, #tpu.memory_space<vmem>>, vector<1x768xf32>
    tpu.vector_store %arg10[%c3, %c129], %0 {strides = array<i32>} : memref<18x1024xf32, #tpu.memory_space<vmem>>, vector<1x768xf32>,
    %c4 = arith.constant 4 : index
    %c128 = arith.constant 128 : index
    %8 = vector.load %arg10[%c4, %c128] : memref<18x1024xf32, #tpu.memory_space<vmem>>, vector<1x768xf32>
    tpu.vector_store %arg10[%c4, %c128], %0 {strides = array<i32>} : memref<18x1024xf32, #tpu.memory_space<vmem>>, vector<1x768xf32>,
    %c5 = arith.constant 5 : index
    %c127 = arith.constant 127 : index
    %9 = vector.load %arg10[%c5, %c127] : memref<18x1024xf32, #tpu.memory_space<vmem>>, vector<1x768xf32>
    tpu.vector_store %arg10[%c5, %c127], %0 {strides = array<i32>} : memref<18x1024xf32, #tpu.memory_space<vmem>>, vector<1x768xf32>,
    %c6 = arith.constant 6 : index
    %c111 = arith.constant 111 : index
    %10 = vector.load %arg10[%c6, %c111] : memref<18x1024xf32, #tpu.memory_space<vmem>>, vector<1x768xf32>
    tpu.vector_store %arg10[%c6, %c111], %0 {strides = array<i32>} : memref<18x1024xf32, #tpu.memory_space<vmem>>, vector<1x768xf32>,
    %c7 = arith.constant 7 : index
    %c110 = arith.constant 110 : index
    %11 = vector.load %arg10[%c7, %c110] : memref<18x1024xf32, #tpu.memory_space<vmem>>, vector<1x768xf32>
    tpu.vector_store %arg10[%c7, %c110], %0 {strides = array<i32>} : memref<18x1024xf32, #tpu.memory_space<vmem>>, vector<1x768xf32>,
    %c8 = arith.constant 8 : index
    %c109 = arith.constant 109 : index
    %12 = vector.load %arg10[%c8, %c109] : memref<18x1024xf32, #tpu.memory_space<vmem>>, vector<1x768xf32>
    tpu.vector_store %arg10[%c8, %c109], %0 {strides = array<i32>} : memref<18x1024xf32, #tpu.memory_space<vmem>>, vector<1x768xf32>,
    %c0_4 = arith.constant 0 : index
    %c0_5 = arith.constant 0 : index
    %13 = vector.load %arg2[%c0_4, %c0_5] : memref<2x9xf32, #tpu.memory_space<vmem>>, vector<2x9xf32>
    %c0_6 = arith.constant 0 : index
    %c128_7 = arith.constant 128 : index
    %14 = vector.load %arg10[%c0_6, %c128_7] : memref<18x1024xf32, #tpu.memory_space<vmem>>, vector<9x768xf32>
    %cst_8 = arith.constant dense<0.000000e+00> : vector<2x768xf32>
    %15 = tpu.matmul %13, %14, %cst_8 {dimension_numbers = #tpu.dot_dimension_numbers<[1], [0], [0], [1], [0, 0, 1, 1], [], []>} : vector<2x9xf32>, vector<9x768xf32>, vector<2x768xf32> -> vector<2x768xf32>
    %c0_9 = arith.constant 0 : index
    %c0_10 = arith.constant 0 : index
    %16 = vector.load %arg5[%c0_9, %c0_10] : memref<2x1xf32, #tpu.memory_space<vmem>>, vector<2x1xf32>
    %17 = vector.broadcast %16 : vector<2x1xf32> to vector<2x768xf32>
    %18 = arith.addf %15, %17 : vector<2x768xf32>
    %cst_11 = arith.constant 0.000000e+00 : f32
    %19 = vector.broadcast %cst_11 : f32 to vector<2x768xf32>
    %20 = arith.maximumf %18, %19 : vector<2x768xf32>
    %cst_12 = arith.constant 0.000000e+00 : f32
    %21 = vector.shape_cast %3 : vector<1x768xi1> to vector<1x768xi1>
    %22 = vector.broadcast %21 : vector<1x768xi1> to vector<2x768xi1>
    %23 = vector.broadcast %cst_12 : f32 to vector<2x768xf32>
    %24 = arith.select %22, %20, %23 : vector<2x768xi1>, vector<2x768xf32>
    %c0_13 = arith.constant 0 : index
    %c147_14 = arith.constant 147 : index
    %25 = vector.load %arg10[%c0_13, %c147_14] : memref<18x1024xf32, #tpu.memory_space<vmem>>, vector<2x768xf32>
    tpu.vector_store %arg10[%c0_13, %c147_14], %24 {strides = array<i32>} : memref<18x1024xf32, #tpu.memory_space<vmem>>, vector<2x768xf32>,
    %c2_15 = arith.constant 2 : index
    %c146_16 = arith.constant 146 : index
    %26 = vector.load %arg10[%c2_15, %c146_16] : memref<18x1024xf32, #tpu.memory_space<vmem>>, vector<2x768xf32>
    tpu.vector_store %arg10[%c2_15, %c146_16], %24 {strides = array<i32>} : memref<18x1024xf32, #tpu.memory_space<vmem>>, vector<2x768xf32>,
    %c4_17 = arith.constant 4 : index
    %c145_18 = arith.constant 145 : index
    %27 = vector.load %arg10[%c4_17, %c145_18] : memref<18x1024xf32, #tpu.memory_space<vmem>>, vector<2x768xf32>
    tpu.vector_store %arg10[%c4_17, %c145_18], %24 {strides = array<i32>} : memref<18x1024xf32, #tpu.memory_space<vmem>>, vector<2x768xf32>,
    %c6_19 = arith.constant 6 : index
    %c129_20 = arith.constant 129 : index
    %28 = vector.load %arg10[%c6_19, %c129_20] : memref<18x1024xf32, #tpu.memory_space<vmem>>, vector<2x768xf32>
    tpu.vector_store %arg10[%c6_19, %c129_20], %24 {strides = array<i32>} : memref<18x1024xf32, #tpu.memory_space<vmem>>, vector<2x768xf32>,
    %c8_21 = arith.constant 8 : index
    %c128_22 = arith.constant 128 : index
    %29 = vector.load %arg10[%c8_21, %c128_22] : memref<18x1024xf32, #tpu.memory_space<vmem>>, vector<2x768xf32>
    tpu.vector_store %arg10[%c8_21, %c128_22], %24 {strides = array<i32>} : memref<18x1024xf32, #tpu.memory_space<vmem>>, vector<2x768xf32>,
    %c10 = arith.constant 10 : index
    %c127_23 = arith.constant 127 : index
    %30 = vector.load %arg10[%c10, %c127_23] : memref<18x1024xf32, #tpu.memory_space<vmem>>, vector<2x768xf32>
    tpu.vector_store %arg10[%c10, %c127_23], %24 {strides = array<i32>} : memref<18x1024xf32, #tpu.memory_space<vmem>>, vector<2x768xf32>,
    %c12 = arith.constant 12 : index
    %c111_24 = arith.constant 111 : index
    %31 = vector.load %arg10[%c12, %c111_24] : memref<18x1024xf32, #tpu.memory_space<vmem>>, vector<2x768xf32>
    tpu.vector_store %arg10[%c12, %c111_24], %24 {strides = array<i32>} : memref<18x1024xf32, #tpu.memory_space<vmem>>, vector<2x768xf32>,
    %c14 = arith.constant 14 : index
    %c110_25 = arith.constant 110 : index
    %32 = vector.load %arg10[%c14, %c110_25] : memref<18x1024xf32, #tpu.memory_space<vmem>>, vector<2x768xf32>
    tpu.vector_store %arg10[%c14, %c110_25], %24 {strides = array<i32>} : memref<18x1024xf32, #tpu.memory_space<vmem>>, vector<2x768xf32>,
    %c16 = arith.constant 16 : index
    %c109_26 = arith.constant 109 : index
    %33 = vector.load %arg10[%c16, %c109_26] : memref<18x1024xf32, #tpu.memory_space<vmem>>, vector<2x768xf32>
    tpu.vector_store %arg10[%c16, %c109_26], %24 {strides = array<i32>} : memref<18x1024xf32, #tpu.memory_space<vmem>>, vector<2x768xf32>,
    %c0_27 = arith.constant 0 : index
    %c0_28 = arith.constant 0 : index
    %34 = vector.load %arg3[%c0_27, %c0_28] : memref<2x18xf32, #tpu.memory_space<vmem>>, vector<2x18xf32>
    %c0_29 = arith.constant 0 : index
    %c128_30 = arith.constant 128 : index
    %35 = vector.load %arg10[%c0_29, %c128_30] : memref<18x1024xf32, #tpu.memory_space<vmem>>, vector<18x768xf32>
    %cst_31 = arith.constant dense<0.000000e+00> : vector<2x768xf32>
    %36 = tpu.matmul %34, %35, %cst_31 {dimension_numbers = #tpu.dot_dimension_numbers<[1], [0], [0], [1], [0, 0, 1, 1], [], []>} : vector<2x18xf32>, vector<18x768xf32>, vector<2x768xf32> -> vector<2x768xf32>
    %c0_32 = arith.constant 0 : index
    %c0_33 = arith.constant 0 : index
    %37 = vector.load %arg6[%c0_32, %c0_33] : memref<2x1xf32, #tpu.memory_space<vmem>>, vector<2x1xf32>
    %38 = vector.broadcast %37 : vector<2x1xf32> to vector<2x768xf32>
    %39 = arith.addf %36, %38 : vector<2x768xf32>
    %cst_34 = arith.constant 0.000000e+00 : f32
    %40 = vector.broadcast %cst_34 : f32 to vector<2x768xf32>
    %41 = arith.maximumf %39, %40 : vector<2x768xf32>
    %cst_35 = arith.constant 0.000000e+00 : f32
    %42 = vector.shape_cast %3 : vector<1x768xi1> to vector<1x768xi1>
    %43 = vector.broadcast %42 : vector<1x768xi1> to vector<2x768xi1>
    %44 = vector.broadcast %cst_35 : f32 to vector<2x768xf32>
    %45 = arith.select %43, %41, %44 : vector<2x768xi1>, vector<2x768xf32>
    %c0_36 = arith.constant 0 : index
    %c147_37 = arith.constant 147 : index
    %46 = vector.load %arg10[%c0_36, %c147_37] : memref<18x1024xf32, #tpu.memory_space<vmem>>, vector<2x768xf32>
    tpu.vector_store %arg10[%c0_36, %c147_37], %45 {strides = array<i32>} : memref<18x1024xf32, #tpu.memory_space<vmem>>, vector<2x768xf32>,
    %c2_38 = arith.constant 2 : index
    %c146_39 = arith.constant 146 : index
    %47 = vector.load %arg10[%c2_38, %c146_39] : memref<18x1024xf32, #tpu.memory_space<vmem>>, vector<2x768xf32>
    tpu.vector_store %arg10[%c2_38, %c146_39], %45 {strides = array<i32>} : memref<18x1024xf32, #tpu.memory_space<vmem>>, vector<2x768xf32>,
    %c4_40 = arith.constant 4 : index
    %c145_41 = arith.constant 145 : index
    %48 = vector.load %arg10[%c4_40, %c145_41] : memref<18x1024xf32, #tpu.memory_space<vmem>>, vector<2x768xf32>
    tpu.vector_store %arg10[%c4_40, %c145_41], %45 {strides = array<i32>} : memref<18x1024xf32, #tpu.memory_space<vmem>>, vector<2x768xf32>,
    %c6_42 = arith.constant 6 : index
    %c129_43 = arith.constant 129 : index
    %49 = vector.load %arg10[%c6_42, %c129_43] : memref<18x1024xf32, #tpu.memory_space<vmem>>, vector<2x768xf32>
    tpu.vector_store %arg10[%c6_42, %c129_43], %45 {strides = array<i32>} : memref<18x1024xf32, #tpu.memory_space<vmem>>, vector<2x768xf32>,
    %c8_44 = arith.constant 8 : index
    %c128_45 = arith.constant 128 : index
    %50 = vector.load %arg10[%c8_44, %c128_45] : memref<18x1024xf32, #tpu.memory_space<vmem>>, vector<2x768xf32>
    tpu.vector_store %arg10[%c8_44, %c128_45], %45 {strides = array<i32>} : memref<18x1024xf32, #tpu.memory_space<vmem>>, vector<2x768xf32>,
    %c10_46 = arith.constant 10 : index
    %c127_47 = arith.constant 127 : index
    %51 = vector.load %arg10[%c10_46, %c127_47] : memref<18x1024xf32, #tpu.memory_space<vmem>>, vector<2x768xf32>
    tpu.vector_store %arg10[%c10_46, %c127_47], %45 {strides = array<i32>} : memref<18x1024xf32, #tpu.memory_space<vmem>>, vector<2x768xf32>,
    %c12_48 = arith.constant 12 : index
    %c111_49 = arith.constant 111 : index
    %52 = vector.load %arg10[%c12_48, %c111_49] : memref<18x1024xf32, #tpu.memory_space<vmem>>, vector<2x768xf32>
    tpu.vector_store %arg10[%c12_48, %c111_49], %45 {strides = array<i32>} : memref<18x1024xf32, #tpu.memory_space<vmem>>, vector<2x768xf32>,
    %c14_50 = arith.constant 14 : index
    %c110_51 = arith.constant 110 : index
    %53 = vector.load %arg10[%c14_50, %c110_51] : memref<18x1024xf32, #tpu.memory_space<vmem>>, vector<2x768xf32>
    tpu.vector_store %arg10[%c14_50, %c110_51], %45 {strides = array<i32>} : memref<18x1024xf32, #tpu.memory_space<vmem>>, vector<2x768xf32>,
    %c16_52 = arith.constant 16 : index
    %c109_53 = arith.constant 109 : index
    %54 = vector.load %arg10[%c16_52, %c109_53] : memref<18x1024xf32, #tpu.memory_space<vmem>>, vector<2x768xf32>
    tpu.vector_store %arg10[%c16_52, %c109_53], %45 {strides = array<i32>} : memref<18x1024xf32, #tpu.memory_space<vmem>>, vector<2x768xf32>,
    %c0_54 = arith.constant 0 : index
    %c0_55 = arith.constant 0 : index
    %55 = vector.load %arg4[%c0_54, %c0_55] : memref<1x18xf32, #tpu.memory_space<vmem>>, vector<1x18xf32>
    %c0_56 = arith.constant 0 : index
    %c128_57 = arith.constant 128 : index
    %56 = vector.load %arg10[%c0_56, %c128_57] : memref<18x1024xf32, #tpu.memory_space<vmem>>, vector<18x768xf32>
    %cst_58 = arith.constant dense<0.000000e+00> : vector<1x768xf32>
    %57 = tpu.matmul %55, %56, %cst_58 {dimension_numbers = #tpu.dot_dimension_numbers<[1], [0], [0], [1], [0, 0, 1, 1], [], []>} : vector<1x18xf32>, vector<18x768xf32>, vector<1x768xf32> -> vector<1x768xf32>
    %c0_59 = arith.constant 0 : index
    %58 = memref.load %arg7[%c0_59] : memref<1xf32, #tpu.memory_space<smem>>
    %59 = vector.broadcast %58 : f32 to vector<1x768xf32>
    %60 = arith.addf %57, %59 : vector<1x768xf32>
    %61 = arith.addf %0, %60 : vector<1x768xf32>
    %c0_60 = arith.constant 0 : index
    %c0_61 = arith.constant 0 : index
    %62 = vector.load %arg9[%c0_60, %c0_61] : memref<1x768xf32, #tpu.memory_space<vmem>>, vector<1x768xf32>
    tpu.vector_store %arg9[%c0_60, %c0_61], %61 {strides = array<i32>} : memref<1x768xf32, #tpu.memory_space<vmem>>, vector<1x768xf32>,
    return
  }
  func.func @transform_0(%arg0: i32) -> (i32, i32) {
    %c0_i32 = arith.constant 0 : i32
    %c0_i32_0 = arith.constant 0 : i32
    return %arg0, %c0_i32 : i32, i32
  }
  func.func @transform_1(%arg0: i32) -> (i32, i32) {
    %c0_i32 = arith.constant 0 : i32
    %c0_i32_0 = arith.constant 0 : i32
    %c0_i32_1 = arith.constant 0 : i32
    return %c0_i32, %c0_i32_0 : i32, i32
  }
  func.func @transform_2(%arg0: i32) -> (i32, i32) {
    %c0_i32 = arith.constant 0 : i32
    %c0_i32_0 = arith.constant 0 : i32
    %c0_i32_1 = arith.constant 0 : i32
    return %c0_i32, %c0_i32_0 : i32, i32
  }
  func.func @transform_3(%arg0: i32) -> (i32, i32) {
    %c0_i32 = arith.constant 0 : i32
    %c0_i32_0 = arith.constant 0 : i32
    %c0_i32_1 = arith.constant 0 : i32
    return %c0_i32, %c0_i32_0 : i32, i32
  }
  func.func @transform_4(%arg0: i32) -> (i32, i32) {
    %c0_i32 = arith.constant 0 : i32
    %c0_i32_0 = arith.constant 0 : i32
    %c0_i32_1 = arith.constant 0 : i32
    return %c0_i32, %c0_i32_0 : i32, i32
  }
  func.func @transform_5(%arg0: i32) -> (i32, i32) {
    %c0_i32 = arith.constant 0 : i32
    %c0_i32_0 = arith.constant 0 : i32
    %c0_i32_1 = arith.constant 0 : i32
    return %c0_i32, %c0_i32_0 : i32, i32
  }
  func.func @transform_6(%arg0: i32) -> i32 {
    %c0_i32 = arith.constant 0 : i32
    %c0_i32_0 = arith.constant 0 : i32
    return %c0_i32 : i32
  }
  func.func @transform_7(%arg0: i32) -> (i32, i32) {
    %c0_i32 = arith.constant 0 : i32
    %c0_i32_0 = arith.constant 0 : i32
    %c0_i32_1 = arith.constant 0 : i32
    return %c0_i32, %c0_i32_0 : i32, i32
  }
  func.func @transform_8(%arg0: i32) -> (i32, i32) {
    %c0_i32 = arith.constant 0 : i32
    %c0_i32_0 = arith.constant 0 : i32
    return %arg0, %c0_i32 : i32, i32
  }
}

</mosaic_0001>

<bundles_post_ra>
// kernel: tpu_custom_call.1
= control target key start
LH: loop header
LB: loop body
LE: loop exit
PB: predicated region body
PF: predicated region fallthrough
CT: control target
= control target key end

     0   :  { %s1705_s29 = smov 17   ;;  %s1706_s30 = smov 19   ;;  %v41_v1 = vlaneseq  ;;  %s2310_s0 = inlined_call_operand.vmem [shape: f32[1,768], index: 0, kind: input, shape index: {}]   ;;  %s2311_s1 = inlined_call_operand.vmem [shape: f32[2,9], index: 1, kind: input, shape index: {}]   ;;  %s2312_s2 = inlined_call_operand.vmem [shape: f32[2,18], index: 2, kind: input, shape index: {}]   ;;  %s2313_s3 = inlined_call_operand.vmem [shape: f32[1,18], index: 3, kind: input, shape index: {}]   ;;  %s2314_s4 = inlined_call_operand.vmem [shape: f32[2,1], index: 4, kind: input, shape index: {}]   ;;  %s2315_s5 = inlined_call_operand.vmem [shape: f32[2,1], index: 5, kind: input, shape index: {}]   ;;  %s2316_s6 = inlined_call_operand.<no memory space> [shape: f32[1], index: 6, kind: input, shape index: {}]   ;;  %s2317_s7 = inlined_call_operand.vmem [shape: f32[1,768], index: 7, kind: input, shape index: {}]   ;;  %s2318_s8 = inlined_call_operand.hbm [shape: f32[1,768], index: 8, kind: output, shape index: {}]  }
   0x1   :  { %v1766_v0 = vld [vmem:[%s2310_s0] sm:$0x3f]  ;;  %s1707_s9 = smov 1   ;;  %s1708_s10 = smov 18  }
   0x2   :  { %60 = vrot.lane.b32.xlu1 %v1766_v0, %s1705_s29  ;;  %35 = vrot.lane.b32.xlu0 %v1766_v0, %s1706_s30  ;;  %vm1777_vm0 = vcmp.lt.s32.totalorder %v41_v1, 768  ;;  %s1709_s0 = smov 111   ;;  %s1710_s11 = smov 127  }
   0x3   :  { %88 = vst.msk [vmem:[#allocation2 + $0xc] ss:$8 sm:$0xf] %vm1777_vm0, %v1766_v0  ;;  %89 = vst.msk [vmem:[#allocation2 + $0xc] ss:$8 sm:$0x30] %vm1777_vm0, %v1766_v0 }
   0x6   :  { %72 = vrot.lane.b32.xlu1 %v1766_v0, %s1707_s9  ;;  %48 = vrot.lane.b32.xlu0 %v1766_v0, %s1708_s10 }
   0xa   :  { %102 = vrot.lane.b32.xlu1 %v1766_v0, %s1709_s0  ;;  %90 = vrot.lane.b32.xlu0 %v1766_v0, %s1710_s11 }
   0xb   :  { %14 = vsyncpa [#allocation5], 0  ;;  %s1711_s12 = smov 109   ;;  %s1712_s13 = smov 110   ;;  %v1713_v3 = vmov 0.0   ;;  %v1714_v5 = vmov 0  }
   0xc   :  { %244 = vmatprep.mubr.f32.mxu0 %v1713_v3  ;;  %315 = vmatprep.mubr.f32.mxu1 %v1713_v3  ;;  %v151_v4 = vld [vmem:[%s2314_s4] sm:$0x3]  ;;  %vm1802_vm1 = vcmp.ge.s32.totalorder %v41_v1, 17  ;;  %vm1807_vm2 = vcmp.lt.s32.totalorder %v41_v1, 785  ;;  %vm1812_vm3 = vcmp.ge.s32.totalorder %v41_v1, 19  ;;  %vm1817_vm4 = vcmp.lt.s32.totalorder %v41_v1, 787 }
   0xd   :  { %1680 = vset.pattern.permute.xlu0 %v1714_v5  ;;  %vm63_vm5 = vcmask 138240   ;;  %vm68_vm6 = vmand %vm1802_vm1, %vm1807_vm2  ;;  %vm2325_vm7 = vcmask 154624   ;;  %vm1830_vm9 = vcmp.ge.s32.totalorder %v41_v1, 1  ;;  %vm1835_vm10 = vcmp.lt.s32.totalorder %v41_v1, 769  ;;  %v32_v7 = vld [vmem:[%s2317_s7] sm:$0x3f] }
   0xe   :  { %126 = vrot.lane.b32.xlu1 %v1766_v0, %s1711_s12  ;;  %114 = vrot.lane.b32.xlu0 %v1766_v0, %s1712_s13  ;;  %vm44_vm8 = vmand %vm1812_vm3, %vm1817_vm4  ;;  %vm1840_vm11 = vcmp.ge.s32.totalorder %v41_v1, 18  ;;  %vm1845_vm12 = vcmp.lt.s32.totalorder %v41_v1, 786  ;;  %vm2319_vm13 = vcmask 7168   ;;  %vm51_vm15 = vcmask 146432  }
   0xf   :  { %vm80_vm14 = vmand %vm1830_vm9, %vm1835_vm10  ;;  %vm1860_vm2 = vcmp.ge.s32.totalorder %v41_v1, 111  ;;  %vm1865_vm3 = vcmp.lt.s32.totalorder %v41_v1, 879  ;;  %vm1870_vm4 = vcmp.ge.s32.totalorder %v41_v1, 127  ;;  %vm93_vm10 = vcmask 1039360  }
  0x10   :  { %vm56_vm1 = vmand %vm1840_vm11, %vm1845_vm12  ;;  %vm1890_vm12 = vcmp.ge.s32.totalorder %v41_v1, 109  ;;  %v1947_v8 = vshrl.u32 %v41_v1, 7 }
  0x11   :  { %vm110_vm9 = vmand %vm1860_vm2, %vm1865_vm3  ;;  %vm1905_vm2 = vcmp.lt.s32.totalorder %v41_v1, 878  ;;  %vm129_vm3 = vcmask 891904  }
  0x12   :  { %154 = vperm.xlu0 %1680, %v151_v4   ;;  %v138_v4 = vld [vmem:[%s2311_s1] sm:$0x3]  ;;  %v402_v9 = vsub.s32 0, %v1947_v8  ;;  %v418_v17 = vsub.s32 4, %v1947_v8 }
  0x74   :  { %v61_v10 = vpop.permute.xlu1 %60  ;;  %v36_v11 = vpop.permute.xlu0 %35 }
  0x75   :  { %v62_v12 = vrot.slane %v61_v10, 7  ;;  %v37_v13 = vrot.slane %v36_v11, 7 }
  0x77   :  { %v64_v18 = vsel %vm63_vm5, %v62_v12, %v61_v10  ;;  %v39_v19 = vsel %vm2325_vm7, %v37_v13, %v36_v11  ;;  %v410_v11 = vsub.s32 2, %v1947_v8  ;;  %v406_v12 = vsub.s32 1, %v1947_v8 }
  0x78   :  { %70 = vst.msk [vmem:[#allocation2 + $0xa] ss:$8 sm:$0xf] %vm68_vm6, %v64_v18  ;;  %71 = vst.msk [vmem:[#allocation2 + $0xa] ss:$8 sm:$0x70] %vm68_vm6, %v64_v18  ;;  %v73_v20 = vpop.permute.xlu1 %72  ;;  %v49_v21 = vpop.permute.xlu0 %48 }
  0x79   :  { %46 = vst.msk [vmem:[#allocation2 + $0x8] ss:$8 sm:$0xf] %vm44_vm8, %v39_v19  ;;  %47 = vst.msk [vmem:[#allocation2 + $0x8] ss:$8 sm:$0x70] %vm44_vm8, %v39_v19 }
  0x7a   :  { %v74_v22 = vrot.slane %v73_v20, 7  ;;  %v50_v23 = vrot.slane %v49_v21, 7  ;;  %vm1875_vm6 = vcmp.lt.s32.totalorder %v41_v1, 895  ;;  %vm105_vm8 = vcmask 908288  }
  0x7b   :  { %vm98_vm11 = vmand %vm1870_vm4, %vm1875_vm6  ;;  %vm117_vm6 = vcmask 900096   ;;  %v414_v13 = vsub.s32 3, %v1947_v8  ;;  %v422_v18 = vsub.s32 5, %v1947_v8 }
  0x7c   :  { %v76_v28 = vsel %vm2319_vm13, %v74_v22, %v73_v20  ;;  %v52_v29 = vsel %vm51_vm15, %v50_v23, %v49_v21  ;;  %v103_v30 = vpop.permute.xlu1 %102  ;;  %v91_v31 = vpop.permute.xlu0 %90 }
  0x7d   :  { %82 = vst.msk [vmem:[#allocation2 + $0xb] ss:$8 sm:$0xf] %vm80_vm14, %v76_v28  ;;  %83 = vst.msk [vmem:[#allocation2 + $0xb] ss:$8 sm:$0x70] %vm80_vm14, %v76_v28 }
  0x7e   :  { %58 = vst.msk [vmem:[#allocation2 + $0x9] ss:$8 sm:$0xf] %vm56_vm1, %v52_v29  ;;  %59 = vst.msk [vmem:[#allocation2 + $0x9] ss:$8 sm:$0x70] %vm56_vm1, %v52_v29 }
  0x7f   :  { %v104_v32 = vrot.slane %v103_v30, 7  ;;  %v92_v33 = vrot.slane %v91_v31, 7  ;;  %vm1895_vm14 = vcmp.lt.s32.totalorder %v41_v1, 877  ;;  %vm1900_vm1 = vcmp.ge.s32.totalorder %v41_v1, 110 }
  0x80   :  { %vm134_vm4 = vmand %vm1890_vm12, %vm1895_vm14  ;;  %v127_v40 = vpop.permute.xlu1 %126  ;;  %v115_v41 = vpop.permute.xlu0 %114  ;;  %vm33_vm14 = vcmp.gt.f32.partialorder %v32_v7, 0.5 }
  0x81   :  { %v106_v38 = vsel %vm105_vm8, %v104_v32, %v103_v30  ;;  %v94_v39 = vsel %vm93_vm10, %v92_v33, %v91_v31  ;;  %v128_v42 = vrot.slane %v127_v40, 7  ;;  %vm122_vm13 = vmand %vm1900_vm1, %vm1905_vm2  ;;  %v116_v43 = vrot.slane %v115_v41, 7 }
  0x82   :  { %112 = vst.msk [vmem:[#allocation2 + $0x6] ss:$8 sm:$0xf] %vm110_vm9, %v106_v38  ;;  %113 = vst.msk [vmem:[#allocation2 + $0x6] ss:$8 sm:$0x70] %vm110_vm9, %v106_v38 }
  0x83   :  { %100 = vst.msk [vmem:[#allocation2 + $0x5] ss:$8 sm:$0xf] %vm98_vm11, %v94_v39  ;;  %101 = vst.msk [vmem:[#allocation2 + $0x5] ss:$8 sm:$0x70] %vm98_vm11, %v94_v39  ;;  %v130_v44 = vsel %vm129_vm3, %v128_v42, %v127_v40  ;;  %v118_v45 = vsel %vm117_vm6, %v116_v43, %v115_v41 }
  0x84   :  { %136 = vst.msk [vmem:[#allocation2 + $0x40] ss:$8 sm:$0xf] %vm134_vm4, %v130_v44  ;;  %137 = vst.msk [vmem:[#allocation2 + $0x40] ss:$8 sm:$0x70] %vm134_vm4, %v130_v44 }
  0x85   :  { %124 = vst.msk [vmem:[#allocation2 + $0x7] ss:$8 sm:$0xf] %vm122_vm13, %v118_v45  ;;  %125 = vst.msk [vmem:[#allocation2 + $0x7] ss:$8 sm:$0x70] %vm122_vm13, %v118_v45 }
  0x86   :  { %vm161_vm9 = vcmask 1040384   ;;  %vm1715_vm11 = vmmov 1   ;;  %vm157_vm13 = vcmask 72704   ;;  %v399_v10 = vsel %vm33_vm14, 1, %v1714_v5 }
  0x87   :  { %vm1921_vm12 = vmpackc.low %vm161_vm9, %vm1715_vm11  ;;  %v1954_v14 = vrot.slane %v399_v10, %v402_v9  ;;  %v1956_v16 = vrot.slane %v399_v10, %v410_v11  ;;  %v1959_v1 = vrot.slane %v399_v10, %v406_v12  ;;  %v1962_v20 = vrot.slane %v399_v10, %v414_v13 }
  0x88   :  { %v1966_v26 = vrot.slane %v399_v10, %v418_v17  ;;  %v1969_v29 = vrot.slane %v399_v10, %v422_v18  ;;  %vm2324_vm14 = vcmask 1043602  }
  0x89   :  { %vm424_vm1 = vcmp.eq.s32.totalorder %v1954_v14, 1  ;;  %vm426_vm2 = vcmp.eq.s32.totalorder %v1956_v16, 1  ;;  %vm425_vm4 = vcmp.eq.s32.totalorder %v1959_v1, 1  ;;  %vm427_vm9 = vcmp.eq.s32.totalorder %v1962_v20, 1 }
  0x8a   :  { %vm2326_vm11 = vcmp.eq.s32.totalorder %v1966_v26, 1 }
  0x8b   :  { %v146_v48 = vld [vmem:[#allocation2 + $0x50] sm:$0x1]  ;;  %v148_v51 = vld [vmem:[#allocation2 + $0x60] sm:$0x1]  ;;  %v145_v53 = vld [vmem:[#allocation2 + $0x48] sm:$0x1] }
  0x8c   :  { %v140_v47 = vld [vmem:[#allocation2 + $0x10] sm:$0xff]  ;;  %v142_v49 = vld [vmem:[#allocation2 + $0x20] sm:$0xff]  ;;  %v139_v52 = vld [vmem:[#allocation2 + $0x8] sm:$0xff] }
  0x8d   :  { %v1625_v50 = vpack.c.bf16 %v146_v48, %v140_v47  ;;  %v1631_v54 = vpack.c.bf16 %v148_v51, %v142_v49  ;;  %v1628_v55 = vpack.c.bf16 %v145_v53, %v139_v52  ;;  %v141_v56 = vld [vmem:[#allocation2 + $0x18] sm:$0xff]  ;;  %v144_v58 = vld [vmem:[#allocation2 + $0x30] sm:$0xff]  ;;  %v143_v61 = vld [vmem:[#allocation2 + $0x28] sm:$0xff] }
  0x8e   :  { %v147_v57 = vld [vmem:[#allocation2 + $0x58] sm:$0x1]  ;;  %v150_v60 = vld [vmem:[#allocation2 + $0x70] sm:$0x1]  ;;  %v149_v62 = vld [vmem:[#allocation2 + $0x68] sm:$0x1] }
  0x8f   :  { %1627 = vmatprep.subr.msk.bf16.mxu0 %vm1921_vm12, %v1625_v50  ;;  %v1634_v59 = vpack.c.bf16 %v147_v57, %v141_v56  ;;  %1633 = vmatprep.subr.msk.bf16.mxu1 %vm1921_vm12, %v1631_v54  ;;  %v1637_v63 = vpack.c.bf16 %v150_v60, %v144_v58  ;;  %v1640_v6 = vpack.c.bf16 %v149_v62, %v143_v61 }
  0x90   :  { %1630 = vmatpush1.bf16.msk.msra.mxu0 %vm1921_vm12, %v1628_v55 }
  0x91   :  { %1636 = vmatpush1.bf16.msk.msra.mxu1 %vm1921_vm12, %v1634_v59  ;;  %1639 = vmatprep.subr.msk.bf16.mxu0 %vm1921_vm12, %v1637_v63  ;;  %v155_v15 = vpop.permute.xlu0 %154  ;;  %v749_v63 = vld [vmem:[%s2315_s5] sm:$0x3] }
  0x93   :  { %1600 = vmatmul.mubr.msk.f32.vlgmr.msra.gmra.mrb[0].mxu0 %vm157_vm13, %v138_v4 }
  0x94   :  { %1603 = vmatmul.mubr.msk.f32.vlgmr.msra.gmra.mrb[0].mxu1 %vm157_vm13, %v138_v4  ;;  %1642 = vmatpush1.bf16.msk.msra.mxu0 %vm1921_vm12, %v1640_v6  ;;  %vm2321_vm12 = vcmp.eq.s32.totalorder %v1969_v29, 1 }
  0x95   :  { %386 = vmatprep.mubr.f32.mxu0 %v1713_v3  ;;  %841 = vmatprep.mubr.f32.mxu1 %v1713_v3 }
  0x97   :  { %1606 = vmatmul.mubr.msk.f32.vlgmr.msra.gmra.mrb[2].mxu0 %vm157_vm13, %v138_v4  ;;  %vm2320_vm13 = vcmask 1041560  }
  0x98   :  { %912 = vmatprep.mubr.f32.mxu0 %v1713_v3 }
 0x166   :  { %v246_v19 = vpop.f32.mrb[0].mxu0 }
 0x167   :  { %v247_v5 = vadd.f32 %v246_v19, %v155_v15  ;;  %v317_v21 = vpop.f32.mrb[0].mxu1  ;;  %v248_v22 = vpop.f32.mrb[1].mxu0 }
 0x168   :  { %v318_v23 = vadd.f32 %v317_v21, %v155_v15  ;;  %v249_v24 = vadd.f32 %v248_v22, %v155_v15  ;;  %v319_v25 = vpop.f32.mrb[1].mxu1 }
 0x169   :  { %v393_v27 = vmax.f32 %v247_v5, 0.0  ;;  %v320_v28 = vadd.f32 %v319_v25, %v155_v15 }
 0x16a   :  { %v395_v30 = vmax.f32 %v318_v23, 0.0  ;;  %v394_v31 = vmax.f32 %v249_v24, 0.0  ;;  %v388_v32 = vpop.f32.mrb[2].mxu0 }
 0x16b   :  { %v430_v33 = vsel %vm424_vm1, %v393_v27, 0.0  ;;  %v396_v34 = vmax.f32 %v320_v28, 0.0  ;;  %v389_v35 = vadd.f32 %v388_v32, %v155_v15  ;;  %v390_v36 = vpop.f32.mrb[3].mxu0 }
 0x16c   :  { %592 = vst [vmem:[#allocation2 + $0x48] sm:$0x3] %v430_v33  ;;  %v432_v37 = vsel %vm426_vm2, %v395_v30, 0.0  ;;  %v431_v38 = vsel %vm425_vm4, %v394_v31, 0.0  ;;  %v391_v39 = vadd.f32 %v390_v36, %v155_v15  ;;  %442 = vrot.lane.b32.xlu1 %v430_v33, %s1706_s30  ;;  %v475_v45 = vrot.slane %v430_v33, 6 }
 0x16d   :  { %594 = vst [vmem:[#allocation2 + $0x58] sm:$0x3] %v432_v37  ;;  %593 = vst [vmem:[#allocation2 + $0x50] sm:$0x3] %v431_v38  ;;  %v1982_v40 = vsel %vm427_vm9, %v396_v34, 0.0  ;;  %v397_v41 = vmax.f32 %v389_v35, 0.0  ;;  %701 = vrot.lane.b32.xlu0 %v432_v37, %s1711_s12 }
 0x16e   :  { %595 = vst [vmem:[#allocation2 + $0x60] sm:$0x3] %v1982_v40  ;;  %v398_v42 = vmax.f32 %v391_v39, 0.0  ;;  %v477_v46 = vrot.slane %v432_v37, 6  ;;  %v514_v47 = vrot.slane %v430_v33, 4  ;;  %v516_v48 = vrot.slane %v432_v37, 4 }
 0x16f   :  { %v1989_v43 = vsel %vm2326_vm11, %v397_v41, 0.0  ;;  %v553_v49 = vrot.slane %v430_v33, 2  ;;  %v555_v50 = vrot.slane %v432_v37, 2  ;;  %v476_v51 = vrot.slane %v431_v38, 6 }
 0x170   :  { %596 = vst [vmem:[#allocation2 + $0x68] sm:$0x3] %v1989_v43  ;;  %v1994_v44 = vsel %vm2321_vm12, %v398_v42, 0.0  ;;  %446 = vrot.lane.b32.xlu1 %v432_v37, %s1706_s30  ;;  %v515_v52 = vrot.slane %v431_v38, 4  ;;  %v554_v53 = vrot.slane %v431_v38, 2  ;;  %v478_v54 = vrot.slane %v1982_v40, 6 }
 0x171   :  { %597 = vst [vmem:[#allocation2 + $0x70] sm:$0x3] %v1994_v44  ;;  %697 = vrot.lane.b32.xlu0 %v430_v33, %s1711_s12  ;;  %v517_v55 = vrot.slane %v1982_v40, 4  ;;  %v556_v56 = vrot.slane %v1982_v40, 2  ;;  %v479_v57 = vrot.slane %v1989_v43, 6  ;;  %v518_v58 = vrot.slane %v1989_v43, 4 }
 0x172   :  { %v557_v59 = vrot.slane %v1989_v43, 2  ;;  %v480_v60 = vrot.slane %v1994_v44, 6  ;;  %v519_v61 = vrot.slane %v1994_v44, 4  ;;  %v558_v62 = vrot.slane %v1994_v44, 2 }
 0x173   :  { %vm2322_vm12 = vcmask 1047566   ;;  %vm662_vm11 = vcmask 906244  }
 0x174   :  { %444 = vrot.lane.b32.xlu1 %v431_v38, %s1706_s30 }
 0x175   :  { %448 = vrot.lane.b32.xlu0 %v1982_v40, %s1706_s30 }
 0x178   :  { %699 = vrot.lane.b32.xlu1 %v431_v38, %s1711_s12 }
 0x179   :  { %481 = vrot.lane.b32.xlu0 %v475_v45, %s1708_s10 }
 0x17c   :  { %602 = vrot.lane.b32.xlu1 %v477_v46, %s1710_s11 }
 0x17d   :  { %520 = vrot.lane.b32.xlu0 %v514_v47, %s1705_s29 }
 0x180   :  { %635 = vrot.lane.b32.xlu1 %v516_v48, %s1709_s0 }
 0x181   :  { %559 = vrot.lane.b32.xlu0 %v553_v49, %s1707_s9 }
 0x184   :  { %668 = vrot.lane.b32.xlu1 %v555_v50, %s1712_s13 }
 0x185   :  { %598 = vrot.lane.b32.xlu0 %v475_v45, %s1710_s11 }
 0x188   :  { %631 = vrot.lane.b32.xlu1 %v514_v47, %s1709_s0 }
 0x189   :  { %664 = vrot.lane.b32.xlu0 %v553_v49, %s1712_s13 }
 0x18c   :  { %485 = vrot.lane.b32.xlu1 %v477_v46, %s1708_s10 }
 0x18d   :  { %600 = vrot.lane.b32.xlu0 %v476_v51, %s1710_s11 }
 0x190   :  { %524 = vrot.lane.b32.xlu1 %v516_v48, %s1705_s29 }
 0x191   :  { %633 = vrot.lane.b32.xlu0 %v515_v52, %s1709_s0 }
 0x194   :  { %563 = vrot.lane.b32.xlu1 %v555_v50, %s1707_s9 }
 0x195   :  { %666 = vrot.lane.b32.xlu0 %v554_v53, %s1712_s13 }
 0x198   :  { %483 = vrot.lane.b32.xlu1 %v476_v51, %s1708_s10 }
 0x199   :  { %487 = vrot.lane.b32.xlu0 %v478_v54, %s1708_s10 }
 0x19c   :  { %522 = vrot.lane.b32.xlu1 %v515_v52, %s1705_s29 }
 0x19d   :  { %526 = vrot.lane.b32.xlu0 %v517_v55, %s1705_s29 }
 0x1a0   :  { %561 = vrot.lane.b32.xlu1 %v554_v53, %s1707_s9 }
 0x1a1   :  { %565 = vrot.lane.b32.xlu0 %v556_v56, %s1707_s9 }
 0x1a4   :  { %604 = vrot.lane.b32.xlu1 %v478_v54, %s1710_s11 }
 0x1a5   :  { %452 = vrot.lane.b32.xlu0 %v1994_v44, %s1706_s30 }
 0x1a8   :  { %637 = vrot.lane.b32.xlu1 %v517_v55, %s1709_s0 }
 0x1a9   :  { %606 = vrot.lane.b32.xlu0 %v479_v57, %s1710_s11 }
 0x1ac   :  { %670 = vrot.lane.b32.xlu1 %v556_v56, %s1712_s13 }
 0x1ad   :  { %639 = vrot.lane.b32.xlu0 %v518_v58, %s1709_s0 }
 0x1b0   :  { %450 = vrot.lane.b32.xlu1 %v1989_v43, %s1706_s30 }
 0x1b1   :  { %672 = vrot.lane.b32.xlu0 %v557_v59, %s1712_s13 }
 0x1b4   :  { %489 = vrot.lane.b32.xlu1 %v479_v57, %s1708_s10 }
 0x1b5   :  { %491 = vrot.lane.b32.xlu0 %v480_v60, %s1708_s10 }
 0x1b8   :  { %528 = vrot.lane.b32.xlu1 %v518_v58, %s1705_s29 }
 0x1b9   :  { %530 = vrot.lane.b32.xlu0 %v519_v61, %s1705_s29 }
 0x1bc   :  { %567 = vrot.lane.b32.xlu1 %v557_v59, %s1707_s9 }
 0x1bd   :  { %569 = vrot.lane.b32.xlu0 %v558_v62, %s1707_s9 }
 0x1c0   :  { %608 = vrot.lane.b32.xlu1 %v480_v60, %s1710_s11 }
 0x1c1   :  { %641 = vrot.lane.b32.xlu0 %v519_v61, %s1709_s0 }
 0x1c4   :  { %674 = vrot.lane.b32.xlu1 %v558_v62, %s1712_s13 }
 0x1c5   :  { %705 = vrot.lane.b32.xlu0 %v1989_v43, %s1711_s12 }
 0x1c8   :  { %703 = vrot.lane.b32.xlu1 %v1982_v40, %s1711_s12 }
 0x1c9   :  { %752 = vperm.xlu0 %1680, %v749_v63  }
 0x1cc   :  { %707 = vrot.lane.b32.xlu1 %v1994_v44, %s1711_s12 }
 0x1de   :  { %v443_v4 = vpop.permute.xlu1 %442 }
 0x1df   :  { %v2061_v6 = vpop.permute.xlu0 %701  ;;  %467 = vst.msk [vmem:[#allocation2 + $0x8] sm:$0x3] %vm2320_vm13, %v443_v4  ;;  %vm2323_vm13 = vcmask 1045644  }
 0x1e2   :  { %v447_v7 = vpop.permute.xlu1 %446 }
 0x1e3   :  { %v698_v9 = vpop.permute.xlu0 %697 }
 0x1e6   :  { %v445_v10 = vpop.permute.xlu1 %444 }
 0x1e7   :  { %v2064_v11 = vpop.permute.xlu0 %448  ;;  %v454_v12 = vsel %vm2325_vm7, %v443_v4, %v445_v10  ;;  %v455_v13 = vsel %vm2325_vm7, %v445_v10, %v447_v7 }
 0x1e8   :  { %v456_v15 = vsel %vm2325_vm7, %v447_v7, %v2064_v11  ;;  %468 = vst [vmem:[#allocation2 + $0x10] sm:$0x3] %v454_v12  ;;  %469 = vst [vmem:[#allocation2 + $0x18] sm:$0x3] %v455_v13 }
 0x1e9   :  { %470 = vst [vmem:[#allocation2 + $0x20] sm:$0x3] %v456_v15 }
 0x1ea   :  { %v700_v17 = vpop.permute.xlu1 %699 }
 0x1eb   :  { %v709_v18 = vsel %vm129_vm3, %v698_v9, %v700_v17  ;;  %v710_v19 = vsel %vm129_vm3, %v700_v17, %v2061_v6  ;;  %v482_v5 = vpop.permute.xlu0 %481 }
 0x1ec   :  { %723 = vst [vmem:[#allocation2 + $0x88] sm:$0x3] %v709_v18  ;;  %724 = vst [vmem:[#allocation2 + $0x90] sm:$0x3] %v710_v19 }
 0x1ed   :  { %506 = vst.msk [vmem:[#allocation2 + $0x8] sm:$0xc] %vm2324_vm14, %v482_v5 }
 0x1ee   :  { %v603_v21 = vpop.permute.xlu1 %602 }
 0x1ef   :  { %v521_v22 = vpop.permute.xlu0 %520 }
 0x1f0   :  { %545 = vst.msk [vmem:[#allocation2 + $0x8] sm:$0x30] %vm2323_vm13, %v521_v22 }
 0x1f2   :  { %v636_v23 = vpop.permute.xlu1 %635 }
 0x1f3   :  { %v560_v24 = vpop.permute.xlu0 %559 }
 0x1f4   :  { %584 = vst.msk [vmem:[#allocation2 + $0x8] sm:$0xc0] %vm2322_vm12, %v560_v24  ;;  %vm2363_vm12 = vcmask 7168  }
 0x1f5   :  { %vm2364_vm13 = vmmov %vm2363_vm12 }
 0x1f6   :  { %v2076_v25 = vpop.permute.xlu1 %668  ;;  %vm2365_vm14 = vmmov %vm2363_vm12 }
 0x1f7   :  { %v599_v27 = vpop.permute.xlu0 %598 }
 0x1fa   :  { %v632_v28 = vpop.permute.xlu1 %631 }
 0x1fb   :  { %v665_v30 = vpop.permute.xlu0 %664  ;;  %v731_v13 = vld [vmem:[#allocation2 + $0x8] sm:$0xff] }
 0x1fe   :  { %v486_v31 = vpop.permute.xlu1 %485 }
 0x1ff   :  { %v601_v32 = vpop.permute.xlu0 %600 }
 0x200   :  { %v610_v33 = vsel %vm93_vm10, %v599_v27, %v601_v32  ;;  %v611_v34 = vsel %vm93_vm10, %v601_v32, %v603_v21 }
 0x201   :  { %624 = vst [vmem:[#allocation2 + $0x48] sm:$0xc] %v610_v33  ;;  %625 = vst [vmem:[#allocation2 + $0x50] sm:$0xc] %v611_v34 }
 0x202   :  { %v525_v35 = vpop.permute.xlu1 %524 }
 0x203   :  { %v634_v36 = vpop.permute.xlu0 %633 }
 0x204   :  { %v643_v37 = vsel %vm105_vm8, %v632_v28, %v634_v36  ;;  %v644_v38 = vsel %vm105_vm8, %v634_v36, %v636_v23 }
 0x205   :  { %657 = vst [vmem:[#allocation2 + $0x48] sm:$0x30] %v643_v37  ;;  %658 = vst [vmem:[#allocation2 + $0x50] sm:$0x30] %v644_v38 }
 0x206   :  { %v564_v39 = vpop.permute.xlu1 %563 }
 0x207   :  { %v667_v40 = vpop.permute.xlu0 %666 }
 0x208   :  { %v676_v41 = vsel %vm117_vm6, %v665_v30, %v667_v40  ;;  %v677_v42 = vsel %vm117_vm6, %v667_v40, %v2076_v25 }
 0x209   :  { %690 = vst [vmem:[#allocation2 + $0x48] sm:$0xc0] %v676_v41  ;;  %691 = vst [vmem:[#allocation2 + $0x50] sm:$0xc0] %v677_v42 }
 0x20a   :  { %v484_v43 = vpop.permute.xlu1 %483 }
 0x20b   :  { %v493_v44 = vsel %vm51_vm15, %v482_v5, %v484_v43  ;;  %v494_v45 = vsel %vm51_vm15, %v484_v43, %v486_v31  ;;  %v2087_v46 = vpop.permute.xlu0 %487  ;;  %v744_v5 = vld [vmem:[#allocation2 + $0x90] sm:$0x3] }
 0x20c   :  { %507 = vst [vmem:[#allocation2 + $0x10] sm:$0xc] %v493_v44  ;;  %508 = vst [vmem:[#allocation2 + $0x18] sm:$0xc] %v494_v45  ;;  %v495_v47 = vsel %vm51_vm15, %v486_v31, %v2087_v46 }
 0x20d   :  { %509 = vst [vmem:[#allocation2 + $0x20] sm:$0xc] %v495_v47 }
 0x20e   :  { %v523_v48 = vpop.permute.xlu1 %522 }
 0x20f   :  { %v532_v49 = vsel %vm63_vm5, %v521_v22, %v523_v48  ;;  %v533_v50 = vsel %vm63_vm5, %v523_v48, %v525_v35  ;;  %v527_v51 = vpop.permute.xlu0 %526  ;;  %v2113_v22 = vld [vmem:[%s2312_s2] sm:$0x3] }
 0x210   :  { %546 = vst [vmem:[#allocation2 + $0x10] sm:$0x30] %v532_v49  ;;  %547 = vst [vmem:[#allocation2 + $0x18] sm:$0x30] %v533_v50  ;;  %v534_v52 = vsel %vm63_vm5, %v525_v35, %v527_v51  ;;  %v737_v62 = vld [vmem:[#allocation2 + $0x48] sm:$0xff]  ;;  %v738_v9 = vld [vmem:[#allocation2 + $0x50] sm:$0xff] }
 0x211   :  { %548 = vst [vmem:[#allocation2 + $0x20] sm:$0x30] %v534_v52  ;;  %v1645_v15 = vpack.c.bf16 %v737_v62, %v731_v13 }
 0x212   :  { %v562_v53 = vpop.permute.xlu1 %561 }
 0x213   :  { %v571_v54 = vsel %vm2363_vm12, %v560_v24, %v562_v53  ;;  %v572_v55 = vsel %vm2364_vm13, %v562_v53, %v564_v39  ;;  %v2096_v56 = vpop.permute.xlu0 %565  ;;  %vm758_vm12 = vcmask 1041408   ;;  %v743_v24 = vld [vmem:[#allocation2 + $0x88] sm:$0x3] }
 0x214   :  { %585 = vst [vmem:[#allocation2 + $0x10] sm:$0xc0] %v571_v54  ;;  %586 = vst [vmem:[#allocation2 + $0x18] sm:$0xc0] %v572_v55  ;;  %v573_v57 = vsel %vm2365_vm14, %v564_v39, %v2096_v56 }
 0x215   :  { %587 = vst [vmem:[#allocation2 + $0x20] sm:$0xc0] %v573_v57  ;;  %vm2366_vm14 = vmmov %vm2364_vm13 }
 0x216   :  { %v605_v58 = vpop.permute.xlu1 %604 }
 0x217   :  { %v612_v59 = vsel %vm93_vm10, %v603_v21, %v605_v58  ;;  %v453_v60 = vpop.permute.xlu0 %452 }
 0x218   :  { %626 = vst [vmem:[#allocation2 + $0x58] sm:$0xc] %v612_v59 }
 0x21a   :  { %v638_v61 = vpop.permute.xlu1 %637 }
 0x21b   :  { %v645_v63 = vsel %vm105_vm8, %v636_v23, %v638_v61  ;;  %v2102_v4 = vpop.permute.xlu0 %606  ;;  %v732_v7 = vld [vmem:[#allocation2 + $0x10] sm:$0xff]  ;;  %v733_v42 = vld [vmem:[#allocation2 + $0x18] sm:$0xff] }
 0x21c   :  { %659 = vst [vmem:[#allocation2 + $0x58] sm:$0x30] %v645_v63  ;;  %v613_v10 = vsel %vm93_vm10, %v605_v58, %v2102_v4  ;;  %v1643_v12 = vpack.c.bf16 %v738_v9, %v732_v7  ;;  %v734_v39 = vld [vmem:[#allocation2 + $0x20] sm:$0xff] }
 0x21d   :  { %627 = vst [vmem:[#allocation2 + $0x60] sm:$0xc] %v613_v10 }
 0x21e   :  { %v671_v17 = vpop.permute.xlu1 %670  ;;  %1644 = vmatprep.subr.bf16.mxu1 %v1643_v12 }
 0x21f   :  { %v678_v18 = vsel %vm117_vm6, %v2076_v25, %v671_v17  ;;  %v640_v19 = vpop.permute.xlu0 %639  ;;  %1646 = vmatpush1.bf16.msra.mxu1 %v1645_v15 }
 0x220   :  { %692 = vst [vmem:[#allocation2 + $0x58] sm:$0xc0] %v678_v18  ;;  %v646_v21 = vsel %vm105_vm8, %v638_v61, %v640_v19  ;;  %1607 = vmatprep.subr.msk.mxu1 %vm758_vm12, %v744_v5 }
 0x221   :  { %660 = vst [vmem:[#allocation2 + $0x60] sm:$0x30] %v646_v21 }
 0x222   :  { %v451_v23 = vpop.permute.xlu1 %450 }
 0x223   :  { %v457_v27 = vsel %vm2325_vm7, %v2064_v11, %v451_v23  ;;  %v458_v25 = vsel %vm2325_vm7, %v451_v23, %v453_v60  ;;  %v673_v28 = vpop.permute.xlu0 %672  ;;  %1608 = vmatpush1.msk.msra.mxu1 %vm758_vm12, %v743_v24  ;;  %vm629_vm7 = vcmask 1035266  }
 0x224   :  { %471 = vst [vmem:[#allocation2 + $0x28] sm:$0x3] %v457_v27  ;;  %472 = vst [vmem:[#allocation2 + $0x30] sm:$0x3] %v458_v25  ;;  %v679_v30 = vsel %vm117_vm6, %v671_v17, %v673_v28  ;;  %1609 = vmatmul.mubr.msk.f32.vlgmr.msra.gmra.mrb[2].mxu1 %vm51_vm15, %v2113_v22 }
 0x225   :  { %693 = vst [vmem:[#allocation2 + $0x60] sm:$0xc0] %v679_v30  ;;  %983 = vmatprep.mubr.f32.mxu1 %v1713_v3 }
 0x226   :  { %v490_v31 = vpop.permute.xlu1 %489 }
 0x227   :  { %v496_v32 = vsel %vm51_vm15, %v2087_v46, %v490_v31  ;;  %v492_v11 = vpop.permute.xlu0 %491  ;;  %v739_v37 = vld [vmem:[#allocation2 + $0x58] sm:$0xff] }
 0x228   :  { %510 = vst [vmem:[#allocation2 + $0x28] sm:$0xc] %v496_v32  ;;  %v497_v33 = vsel %vm51_vm15, %v490_v31, %v492_v11  ;;  %v1649_v44 = vpack.c.bf16 %v739_v37, %v733_v42 }
 0x229   :  { %511 = vst [vmem:[#allocation2 + $0x30] sm:$0xc] %v497_v33 }
 0x22a   :  { %v529_v34 = vpop.permute.xlu1 %528 }
 0x22b   :  { %v535_v35 = vsel %vm63_vm5, %v527_v51, %v529_v34  ;;  %v531_v36 = vpop.permute.xlu0 %530 }
 0x22c   :  { %549 = vst [vmem:[#allocation2 + $0x28] sm:$0x30] %v535_v35  ;;  %v536_v38 = vsel %vm63_vm5, %v529_v34, %v531_v36  ;;  %v740_v40 = vld [vmem:[#allocation2 + $0x60] sm:$0xff] }
 0x22d   :  { %550 = vst [vmem:[#allocation2 + $0x30] sm:$0x30] %v536_v38  ;;  %v1647_v41 = vpack.c.bf16 %v740_v40, %v734_v39 }
 0x22e   :  { %v568_v43 = vpop.permute.xlu1 %567 }
 0x22f   :  { %v574_v45 = vsel %vm2364_vm13, %v2096_v56, %v568_v43  ;;  %1648 = vmatprep.subr.bf16.mxu0 %v1647_v41  ;;  %v570_v46 = vpop.permute.xlu0 %569  ;;  %vm695_vm13 = vcmask 900102  }
 0x230   :  { %588 = vst [vmem:[#allocation2 + $0x28] sm:$0xc0] %v574_v45  ;;  %v575_v47 = vsel %vm2366_vm14, %v568_v43, %v570_v46  ;;  %1650 = vmatpush1.bf16.msra.mxu0 %v1649_v44  ;;  %vm728_vm14 = vcmask 885760  }
 0x231   :  { %589 = vst [vmem:[#allocation2 + $0x30] sm:$0xc0] %v575_v47 }
 0x232   :  { %v609_v48 = vpop.permute.xlu1 %608 }
 0x233   :  { %v614_v49 = vsel %vm93_vm10, %v2102_v4, %v609_v48  ;;  %630 = vst.msk [vmem:[#allocation2 + $0x70] sm:$0xc] %vm629_vm7, %v609_v48  ;;  %v642_v50 = vpop.permute.xlu0 %641 }
 0x234   :  { %628 = vst [vmem:[#allocation2 + $0x68] sm:$0xc] %v614_v49  ;;  %v647_v51 = vsel %vm105_vm8, %v640_v19, %v642_v50  ;;  %663 = vst.msk [vmem:[#allocation2 + $0x70] sm:$0x30] %vm662_vm11, %v642_v50 }
 0x235   :  { %661 = vst [vmem:[#allocation2 + $0x68] sm:$0x30] %v647_v51 }
 0x236   :  { %v675_v52 = vpop.permute.xlu1 %674 }
 0x237   :  { %v680_v53 = vsel %vm117_vm6, %v673_v28, %v675_v52  ;;  %696 = vst.msk [vmem:[#allocation2 + $0x70] sm:$0xc0] %vm695_vm13, %v675_v52  ;;  %v706_v54 = vpop.permute.xlu0 %705  ;;  %v735_v63 = vld [vmem:[#allocation2 + $0x28] sm:$0xff] }
 0x238   :  { %694 = vst [vmem:[#allocation2 + $0x68] sm:$0xc0] %v680_v53  ;;  %v736_v59 = vld [vmem:[#allocation2 + $0x30] sm:$0xff] }
 0x23a   :  { %v704_v55 = vpop.permute.xlu1 %703 }
 0x23b   :  { %v711_v56 = vsel %vm129_vm3, %v2061_v6, %v704_v55  ;;  %v712_v57 = vsel %vm129_vm3, %v704_v55, %v706_v54 }
 0x23c   :  { %725 = vst [vmem:[#allocation2 + $0x98] sm:$0x3] %v711_v56  ;;  %726 = vst [vmem:[#allocation2 + $0xa0] sm:$0x3] %v712_v57 }
 0x23e   :  { %v708_v58 = vpop.permute.xlu1 %707  ;;  %v742_v60 = vld [vmem:[#allocation2 + $0x70] sm:$0xff] }
 0x23f   :  { %v713_v61 = vsel %vm129_vm3, %v706_v54, %v708_v58  ;;  %729 = vst.msk [vmem:[#allocation2 + $0xb0] sm:$0x3] %vm728_vm14, %v708_v58  ;;  %v1651_v62 = vpack.c.bf16 %v742_v60, %v736_v59  ;;  %v741_v4 = vld [vmem:[#allocation2 + $0x68] sm:$0xff] }
 0x240   :  { %727 = vst [vmem:[#allocation2 + $0xa8] sm:$0x3] %v713_v61  ;;  %v1653_v7 = vpack.c.bf16 %v741_v4, %v735_v63 }
 0x241   :  { %1652 = vmatprep.subr.bf16.mxu1 %v1651_v62 }
 0x242   :  { %1654 = vmatpush1.bf16.msra.mxu1 %v1653_v7 }
 0x243   :  { %v746_v6 = vld [vmem:[#allocation2 + $0xa0] sm:$0x3]  ;;  %v745_v9 = vld [vmem:[#allocation2 + $0x98] sm:$0x3] }
 0x244   :  { %1610 = vmatprep.subr.msk.mxu0 %vm758_vm12, %v746_v6 }
 0x245   :  { %1611 = vmatpush1.msk.msra.mxu0 %vm758_vm12, %v745_v9 }
 0x246   :  { %1612 = vmatmul.mubr.msk.f32.vlgmr.msra.gmra.mrb[4].mxu0 %vm51_vm15, %v2113_v22  ;;  %v748_v10 = vld [vmem:[#allocation2 + $0xb0] sm:$0x3] }
 0x247   :  { %1613 = vmatprep.subr.msk.mxu1 %vm758_vm12, %v748_v10  ;;  %v747_v12 = vld [vmem:[#allocation2 + $0xa8] sm:$0x3]  ;;  %1386 = vmatprep.mubr.f32.mxu0 %v1713_v3 }
 0x248   :  { %1614 = vmatpush1.msk.msra.mxu1 %vm758_vm12, %v747_v12  ;;  %v753_v13 = vpop.permute.xlu0 %752 }
 0x249   :  { %1615 = vmatmul.mubr.msk.f32.vlgmr.msra.gmra.mrb[4].mxu1 %vm51_vm15, %v2113_v22 }
 0x24a   :  { %1457 = vmatprep.mubr.f32.mxu1 %v1713_v3 }
 0x2f7   :  { %v843_v15 = vpop.f32.mrb[2].mxu1 }
 0x2f8   :  { %v844_v17 = vadd.f32 %v843_v15, %v753_v13  ;;  %v845_v18 = vpop.f32.mrb[3].mxu1 }
 0x2f9   :  { %v846_v19 = vadd.f32 %v845_v18, %v753_v13 }
 0x2fa   :  { %v990_v5 = vmax.f32 %v844_v17, 0.0 }
 0x2fb   :  { %v991_v21 = vmax.f32 %v846_v19, 0.0 }
 0x2fc   :  { %v996_v23 = vsel %vm424_vm1, %v990_v5, 0.0  ;;  %vm2367_vm1 = vcmp.eq.s32.totalorder %v1966_v26, 1 }
 0x2fd   :  { %1150 = vst [vmem:[#allocation2 + $0x48] sm:$0x3] %v996_v23  ;;  %v997_v24 = vsel %vm425_vm4, %v991_v21, 0.0  ;;  %1008 = vrot.lane.b32.xlu1 %v996_v23, %s1706_s30  ;;  %v1039_v22 = vrot.slane %v996_v23, 6  ;;  %v1076_v27 = vrot.slane %v996_v23, 4  ;;  %v1113_v1 = vrot.slane %v996_v23, 2 }
 0x2fe   :  { %1151 = vst [vmem:[#allocation2 + $0x50] sm:$0x3] %v997_v24  ;;  %1010 = vrot.lane.b32.xlu0 %v997_v24, %s1706_s30  ;;  %v1040_v14 = vrot.slane %v997_v24, 6  ;;  %v1077_v25 = vrot.slane %v997_v24, 4  ;;  %v1114_v28 = vrot.slane %v997_v24, 2  ;;  %vm2368_vm4 = vcmp.eq.s32.totalorder %v1969_v29, 1 }
 0x301   :  { %1249 = vrot.lane.b32.xlu1 %v996_v23, %s1711_s12 }
 0x302   :  { %1251 = vrot.lane.b32.xlu0 %v997_v24, %s1711_s12 }
 0x305   :  { %1045 = vrot.lane.b32.xlu1 %v1039_v22, %s1708_s10 }
 0x306   :  { %1187 = vrot.lane.b32.xlu0 %v1076_v27, %s1709_s0 }
 0x309   :  { %1082 = vrot.lane.b32.xlu1 %v1076_v27, %s1705_s29 }
 0x30a   :  { %1047 = vrot.lane.b32.xlu0 %v1040_v14, %s1708_s10 }
 0x30d   :  { %1119 = vrot.lane.b32.xlu1 %v1113_v1, %s1707_s9 }
 0x30e   :  { %1084 = vrot.lane.b32.xlu0 %v1077_v25, %s1705_s29 }
 0x311   :  { %1156 = vrot.lane.b32.xlu1 %v1039_v22, %s1710_s11 }
 0x312   :  { %1121 = vrot.lane.b32.xlu0 %v1114_v28, %s1707_s9 }
 0x315   :  { %1218 = vrot.lane.b32.xlu1 %v1113_v1, %s1712_s13 }
 0x319   :  { %v914_v30 = vpop.f32.mrb[4].mxu0  ;;  %1158 = vrot.lane.b32.xlu1 %v1040_v14, %s1710_s11 }
 0x31a   :  { %v915_v31 = vadd.f32 %v914_v30, %v753_v13  ;;  %v916_v32 = vpop.f32.mrb[5].mxu0 }
 0x31b   :  { %v917_v11 = vadd.f32 %v916_v32, %v753_v13 }
 0x31c   :  { %v992_v33 = vmax.f32 %v915_v31, 0.0  ;;  %v985_v34 = vpop.f32.mrb[4].mxu1 }
 0x31d   :  { %v993_v35 = vmax.f32 %v917_v11, 0.0  ;;  %v986_v36 = vadd.f32 %v985_v34, %v753_v13  ;;  %v987_v37 = vpop.f32.mrb[5].mxu1  ;;  %1189 = vrot.lane.b32.xlu1 %v1077_v25, %s1709_s0 }
 0x31e   :  { %v998_v38 = vsel %vm426_vm2, %v992_v33, 0.0  ;;  %v988_v39 = vadd.f32 %v987_v37, %v753_v13  ;;  %vm2369_vm2 = vcmask 1041560  }
 0x31f   :  { %1152 = vst [vmem:[#allocation2 + $0x58] sm:$0x3] %v998_v38  ;;  %v999_v40 = vsel %vm427_vm9, %v993_v35, 0.0  ;;  %v994_v41 = vmax.f32 %v986_v36, 0.0  ;;  %1012 = vrot.lane.b32.xlu0 %v998_v38, %s1706_s30  ;;  %v1041_v44 = vrot.slane %v998_v38, 6  ;;  %v1078_v20 = vrot.slane %v998_v38, 4 }
 0x320   :  { %1153 = vst [vmem:[#allocation2 + $0x60] sm:$0x3] %v999_v40  ;;  %v995_v42 = vmax.f32 %v988_v39, 0.0  ;;  %v1115_v45 = vrot.slane %v998_v38, 2  ;;  %v1042_v26 = vrot.slane %v999_v40, 6  ;;  %v1079_v29 = vrot.slane %v999_v40, 4 }
 0x321   :  { %v1000_v43 = vsel %vm2367_vm1, %v994_v41, 0.0  ;;  %1220 = vrot.lane.b32.xlu1 %v1114_v28, %s1712_s13  ;;  %v1116_v46 = vrot.slane %v999_v40, 2  ;;  %vm2370_vm9 = vcmask 154624   ;;  %vm2371_vm1 = vcmask 1043602  }
 0x322   :  { %1154 = vst [vmem:[#allocation2 + $0x68] sm:$0x3] %v1000_v43  ;;  %v1001_v16 = vsel %vm2368_vm4, %v995_v42, 0.0  ;;  %v1043_v47 = vrot.slane %v1000_v43, 6  ;;  %v1080_v48 = vrot.slane %v1000_v43, 4  ;;  %v1117_v49 = vrot.slane %v1000_v43, 2 }
 0x323   :  { %1155 = vst [vmem:[#allocation2 + $0x70] sm:$0x3] %v1001_v16  ;;  %1160 = vrot.lane.b32.xlu0 %v1041_v44, %s1710_s11  ;;  %v1044_v50 = vrot.slane %v1001_v16, 6  ;;  %v1081_v51 = vrot.slane %v1001_v16, 4  ;;  %v1118_v52 = vrot.slane %v1001_v16, 2  ;;  %vm2372_vm4 = vcmask 1045644  }
 0x325   :  { %1253 = vrot.lane.b32.xlu1 %v998_v38, %s1711_s12 }
 0x327   :  { %1191 = vrot.lane.b32.xlu0 %v1078_v20, %s1709_s0 }
 0x329   :  { %1014 = vrot.lane.b32.xlu1 %v999_v40, %s1706_s30 }
 0x32b   :  { %1222 = vrot.lane.b32.xlu0 %v1115_v45, %s1712_s13 }
 0x32d   :  { %1051 = vrot.lane.b32.xlu1 %v1042_v26, %s1708_s10 }
 0x32f   :  { %1049 = vrot.lane.b32.xlu0 %v1041_v44, %s1708_s10 }
 0x331   :  { %1088 = vrot.lane.b32.xlu1 %v1079_v29, %s1705_s29 }
 0x333   :  { %1086 = vrot.lane.b32.xlu0 %v1078_v20, %s1705_s29 }
 0x335   :  { %1125 = vrot.lane.b32.xlu1 %v1116_v46, %s1707_s9 }
 0x337   :  { %1123 = vrot.lane.b32.xlu0 %v1115_v45, %s1707_s9 }
 0x339   :  { %1018 = vrot.lane.b32.xlu1 %v1001_v16, %s1706_s30 }
 0x33b   :  { %1162 = vrot.lane.b32.xlu0 %v1042_v26, %s1710_s11 }
 0x33d   :  { %1164 = vrot.lane.b32.xlu1 %v1043_v47, %s1710_s11 }
 0x33f   :  { %1193 = vrot.lane.b32.xlu0 %v1079_v29, %s1709_s0 }
 0x341   :  { %1195 = vrot.lane.b32.xlu1 %v1080_v48, %s1709_s0 }
 0x343   :  { %1224 = vrot.lane.b32.xlu0 %v1116_v46, %s1712_s13 }
 0x345   :  { %1226 = vrot.lane.b32.xlu1 %v1117_v49, %s1712_s13 }
 0x347   :  { %1016 = vrot.lane.b32.xlu0 %v1000_v43, %s1706_s30 }
 0x349   :  { %1055 = vrot.lane.b32.xlu1 %v1044_v50, %s1708_s10 }
 0x34b   :  { %1053 = vrot.lane.b32.xlu0 %v1043_v47, %s1708_s10 }
 0x34d   :  { %1092 = vrot.lane.b32.xlu1 %v1081_v51, %s1705_s29 }
 0x34f   :  { %1090 = vrot.lane.b32.xlu0 %v1080_v48, %s1705_s29 }
 0x351   :  { %1129 = vrot.lane.b32.xlu1 %v1118_v52, %s1707_s9 }
 0x353   :  { %1127 = vrot.lane.b32.xlu0 %v1117_v49, %s1707_s9  ;;  %v2250_v49 = vld [vmem:[%s2313_s3] sm:$0x1] }
 0x355   :  { %1197 = vrot.lane.b32.xlu1 %v1081_v51, %s1709_s0 }
 0x357   :  { %1166 = vrot.lane.b32.xlu0 %v1044_v50, %s1710_s11 }
 0x359   :  { %1257 = vrot.lane.b32.xlu1 %v1000_v43, %s1711_s12 }
 0x35b   :  { %1228 = vrot.lane.b32.xlu0 %v1118_v52, %s1712_s13 }
 0x35f   :  { %1255 = vrot.lane.b32.xlu0 %v999_v40, %s1711_s12 }
 0x363   :  { %1259 = vrot.lane.b32.xlu0 %v1001_v16, %s1711_s12 }
 0x36f   :  { %v1009_v53 = vpop.permute.xlu1 %1008 }
 0x370   :  { %1032 = vst.msk [vmem:[#allocation2 + $0x8] sm:$0x3] %vm2369_vm2, %v1009_v53  ;;  %v1011_v54 = vpop.permute.xlu0 %1010  ;;  %vm2373_vm2 = vcmask 1047566  }
 0x371   :  { %v1020_v55 = vsel %vm2370_vm9, %v1009_v53, %v1011_v54  ;;  %vm2374_vm9 = vcmask 7168  }
 0x372   :  { %1033 = vst [vmem:[#allocation2 + $0x10] sm:$0x3] %v1020_v55 }
 0x373   :  { %v1250_v56 = vpop.permute.xlu1 %1249 }
 0x374   :  { %v1252_v57 = vpop.permute.xlu0 %1251 }
 0x375   :  { %v1261_v58 = vsel %vm129_vm3, %v1250_v56, %v1252_v57 }
 0x376   :  { %1274 = vst [vmem:[#allocation2 + $0x88] sm:$0x3] %v1261_v58 }
 0x377   :  { %v1046_v59 = vpop.permute.xlu1 %1045 }
 0x378   :  { %1069 = vst.msk [vmem:[#allocation2 + $0x8] sm:$0xc] %vm2371_vm1, %v1046_v59  ;;  %v1188_v60 = vpop.permute.xlu0 %1187  ;;  %vm2375_vm1 = vcmask 154624  }
 0x37b   :  { %v1083_v61 = vpop.permute.xlu1 %1082 }
 0x37c   :  { %1106 = vst.msk [vmem:[#allocation2 + $0x8] sm:$0x30] %vm2372_vm4, %v1083_v61  ;;  %v1048_v62 = vpop.permute.xlu0 %1047  ;;  %vm2376_vm4 = vmmov %vm2375_vm1 }
 0x37d   :  { %v1057_v63 = vsel %vm51_vm15, %v1046_v59, %v1048_v62  ;;  %v1293_v51 = vld [vmem:[#allocation2 + $0x88] sm:$0x3] }
 0x37e   :  { %1070 = vst [vmem:[#allocation2 + $0x10] sm:$0xc] %v1057_v63 }
 0x37f   :  { %v1120_v4 = vpop.permute.xlu1 %1119 }
 0x380   :  { %1143 = vst.msk [vmem:[#allocation2 + $0x8] sm:$0xc0] %vm2373_vm2, %v1120_v4  ;;  %v1085_v7 = vpop.permute.xlu0 %1084  ;;  %vm2377_vm2 = vmmov %vm2374_vm9 }
 0x381   :  { %v1094_v6 = vsel %vm63_vm5, %v1083_v61, %v1085_v7 }
 0x382   :  { %1107 = vst [vmem:[#allocation2 + $0x10] sm:$0x30] %v1094_v6 }
 0x383   :  { %v1157_v9 = vpop.permute.xlu1 %1156 }
 0x384   :  { %v1122_v10 = vpop.permute.xlu0 %1121 }
 0x385   :  { %v1131_v12 = vsel %vm2374_vm9, %v1120_v4, %v1122_v10  ;;  %vm2378_vm9 = vmmov %vm2377_vm2 }
 0x386   :  { %1144 = vst [vmem:[#allocation2 + $0x10] sm:$0xc0] %v1131_v12 }
 0x387   :  { %v1219_v13 = vpop.permute.xlu1 %1218  ;;  %v1281_v20 = vld [vmem:[#allocation2 + $0x8] sm:$0xff] }
 0x38b   :  { %v1159_v15 = vpop.permute.xlu1 %1158 }
 0x38c   :  { %v1168_v17 = vsel %vm93_vm10, %v1157_v9, %v1159_v15 }
 0x38d   :  { %1181 = vst [vmem:[#allocation2 + $0x48] sm:$0xc] %v1168_v17  ;;  %v1282_v42 = vld [vmem:[#allocation2 + $0x10] sm:$0xff] }
 0x38f   :  { %v1190_v18 = vpop.permute.xlu1 %1189 }
 0x390   :  { %v1199_v19 = vsel %vm105_vm8, %v1188_v60, %v1190_v18 }
 0x391   :  { %1212 = vst [vmem:[#allocation2 + $0x48] sm:$0x30] %v1199_v19  ;;  %v1013_v5 = vpop.permute.xlu0 %1012 }
 0x392   :  { %v1021_v21 = vsel %vm2375_vm1, %v1011_v54, %v1013_v5 }
 0x393   :  { %1034 = vst [vmem:[#allocation2 + $0x18] sm:$0x3] %v1021_v21  ;;  %v1221_v23 = vpop.permute.xlu1 %1220 }
 0x394   :  { %v1230_v24 = vsel %vm117_vm6, %v1219_v13, %v1221_v23 }
 0x395   :  { %1243 = vst [vmem:[#allocation2 + $0x48] sm:$0xc0] %v1230_v24  ;;  %v1161_v22 = vpop.permute.xlu0 %1160 }
 0x396   :  { %v1169_v27 = vsel %vm93_vm10, %v1159_v15, %v1161_v22 }
 0x397   :  { %1182 = vst [vmem:[#allocation2 + $0x50] sm:$0xc] %v1169_v27  ;;  %v2227_v14 = vpop.permute.xlu1 %1253 }
 0x398   :  { %v1262_v1 = vsel %vm129_vm3, %v1252_v57, %v2227_v14 }
 0x399   :  { %1275 = vst [vmem:[#allocation2 + $0x90] sm:$0x3] %v1262_v1  ;;  %v1192_v25 = vpop.permute.xlu0 %1191 }
 0x39a   :  { %v1200_v28 = vsel %vm105_vm8, %v1190_v18, %v1192_v25 }
 0x39b   :  { %1213 = vst [vmem:[#allocation2 + $0x50] sm:$0x30] %v1200_v28  ;;  %v1015_v30 = vpop.permute.xlu1 %1014 }
 0x39c   :  { %v1022_v31 = vsel %vm2376_vm4, %v1013_v5, %v1015_v30  ;;  %v1287_v39 = vld [vmem:[#allocation2 + $0x48] sm:$0xff]  ;;  %vm2379_vm4 = vmmov %vm2375_vm1 }
 0x39d   :  { %1035 = vst [vmem:[#allocation2 + $0x20] sm:$0x3] %v1022_v31  ;;  %v1223_v32 = vpop.permute.xlu0 %1222  ;;  %v1657_v45 = vpack.c.bf16 %v1287_v39, %v1281_v20 }
 0x39e   :  { %v1231_v11 = vsel %vm117_vm6, %v1221_v23, %v1223_v32 }
 0x39f   :  { %1244 = vst [vmem:[#allocation2 + $0x50] sm:$0xc0] %v1231_v11  ;;  %v1052_v33 = vpop.permute.xlu1 %1051 }
 0x3a0   :  { %v1294_v47 = vld [vmem:[#allocation2 + $0x90] sm:$0x3] }
 0x3a1   :  { %v1050_v34 = vpop.permute.xlu0 %1049 }
 0x3a2   :  { %v1058_v35 = vsel %vm51_vm15, %v1048_v62, %v1050_v34  ;;  %v1059_v36 = vsel %vm51_vm15, %v1050_v34, %v1052_v33 }
 0x3a3   :  { %1071 = vst [vmem:[#allocation2 + $0x18] sm:$0xc] %v1058_v35  ;;  %1072 = vst [vmem:[#allocation2 + $0x20] sm:$0xc] %v1059_v36  ;;  %v2236_v37 = vpop.permute.xlu1 %1088 }
 0x3a5   :  { %v1087_v38 = vpop.permute.xlu0 %1086 }
 0x3a6   :  { %v1095_v40 = vsel %vm63_vm5, %v1085_v7, %v1087_v38  ;;  %v1096_v41 = vsel %vm63_vm5, %v1087_v38, %v2236_v37  ;;  %v1288_v43 = vld [vmem:[#allocation2 + $0x50] sm:$0xff] }
 0x3a7   :  { %1108 = vst [vmem:[#allocation2 + $0x18] sm:$0x30] %v1095_v40  ;;  %1109 = vst [vmem:[#allocation2 + $0x20] sm:$0x30] %v1096_v41  ;;  %v2241_v44 = vpop.permute.xlu1 %1125  ;;  %v1655_v16 = vpack.c.bf16 %v1288_v43, %v1282_v42 }
 0x3a9   :  { %v1124_v26 = vpop.permute.xlu0 %1123  ;;  %1656 = vmatprep.subr.bf16.mxu0 %v1655_v16 }
 0x3aa   :  { %v1132_v29 = vsel %vm2377_vm2, %v1122_v10, %v1124_v26  ;;  %v1133_v46 = vsel %vm2378_vm9, %v1124_v26, %v2241_v44  ;;  %1658 = vmatpush1.bf16.msra.mxu0 %v1657_v45  ;;  %vm2380_vm9 = vmmov %vm2377_vm2 }
 0x3ab   :  { %1145 = vst [vmem:[#allocation2 + $0x18] sm:$0xc0] %v1132_v29  ;;  %1146 = vst [vmem:[#allocation2 + $0x20] sm:$0xc0] %v1133_v46  ;;  %1616 = vmatprep.subr.msk.mxu0 %vm758_vm12, %v1294_v47  ;;  %v1019_v48 = vpop.permute.xlu1 %1018  ;;  %v1300_v29 = vstv %s2316_s6  ;;  %s1717_s6 = smov [#allocation4]  }
 0x3ac   :  { %s1590_s22 = sshll.u32 %s1717_s6, 4  ;;  %s1591_s22 = int_to_ptr.vmem [resolvable:$true] %s1590_s22 }
 0x3ad   :  { %v1163_v50 = vpop.permute.xlu0 %1162  ;;  %s1681_s23 = scalar_lea.vmem %s1591_s22, 96  ;;  %p1686_p1 = scmp.lt.s32.totalorder %s1591_s22, %s1591_s22 }
 0x3ae   :  { %v1170_v52 = vsel %vm93_vm10, %v1161_v22, %v1163_v50  ;;  %1617 = vmatpush1.msk.msra.mxu0 %vm758_vm12, %v1293_v51  ;;  %p1682_p0 = scmp.ne.s32.totalorder %s1591_s22, %s1681_s23  ;;  %p1687_p2 = scmp.lt.s32.totalorder %s1681_s23, %s1681_s23 }
 0x3af   :  { %1183 = vst [vmem:[#allocation2 + $0x58] sm:$0xc] %v1170_v52  ;;  %v1165_v53 = vpop.permute.xlu1 %1164  ;;  %1618 = vmatmul.mubr.msk.f32.vlgmr.msra.gmra.mrb[6].mxu0 %vm51_vm15, %v2250_v49  ;;  %v1716_v52 = vmov 1966171168  }
 0x3b0   :  { %v1171_v54 = vsel %vm93_vm10, %v1163_v50, %v1165_v53  ;;  %1528 = vmatprep.mubr.f32.mxu0 %v1713_v3  ;;  %p1688_p3 = por %p1687_p2, %p1686_p1 }
 0x3b1   :  { %1184 = vst [vmem:[#allocation2 + $0x60] sm:$0xc] %v1171_v54  ;;  %v1194_v55 = vpop.permute.xlu0 %1193 }
 0x3b2   :  { %v1201_v56 = vsel %vm105_vm8, %v1192_v25, %v1194_v55  ;;  %v1284_v15 = vld [vmem:[#allocation2 + $0x20] sm:$0xff]  ;;  %v1283_v5 = vld [vmem:[#allocation2 + $0x18] sm:$0xff]  ;;  %p1689_p4 = pnand %p1688_p3, %p1682_p0 }
 0x3b3   :  { %1214 = vst [vmem:[#allocation2 + $0x58] sm:$0x30] %v1201_v56  ;;  %v1196_v57 = vpop.permute.xlu1 %1195 }
 0x3b4   :  { %v1202_v58 = vsel %vm105_vm8, %v1194_v55, %v1196_v57 }
 0x3b5   :  { %1215 = vst [vmem:[#allocation2 + $0x60] sm:$0x30] %v1202_v58  ;;  %v1225_v59 = vpop.permute.xlu0 %1224 }
 0x3b6   :  { %v1232_v60 = vsel %vm117_vm6, %v1223_v32, %v1225_v59 }
 0x3b7   :  { %1245 = vst [vmem:[#allocation2 + $0x58] sm:$0xc0] %v1232_v60  ;;  %v1227_v61 = vpop.permute.xlu1 %1226 }
 0x3b8   :  { %v1233_v62 = vsel %vm117_vm6, %v1225_v59, %v1227_v61 }
 0x3b9   :  { %1246 = vst [vmem:[#allocation2 + $0x60] sm:$0xc0] %v1233_v62  ;;  %v1017_v63 = vpop.permute.xlu0 %1016 }
 0x3ba   :  { %v1023_v3 = vsel %vm2375_vm1, %v1015_v30, %v1017_v63  ;;  %v1024_v4 = vsel %vm2379_vm4, %v1017_v63, %v1019_v48 }
 0x3bb   :  { %1036 = vst [vmem:[#allocation2 + $0x28] sm:$0x3] %v1023_v3  ;;  %1037 = vst [vmem:[#allocation2 + $0x30] sm:$0x3] %v1024_v4  ;;  %v1056_v7 = vpop.permute.xlu1 %1055 }
 0x3bd   :  { %v1054_v6 = vpop.permute.xlu0 %1053 }
 0x3be   :  { %v1060_v9 = vsel %vm51_vm15, %v1052_v33, %v1054_v6  ;;  %v1061_v10 = vsel %vm51_vm15, %v1054_v6, %v1056_v7  ;;  %v1289_v13 = vld [vmem:[#allocation2 + $0x58] sm:$0xff] }
 0x3bf   :  { %1073 = vst [vmem:[#allocation2 + $0x28] sm:$0xc] %v1060_v9  ;;  %1074 = vst [vmem:[#allocation2 + $0x30] sm:$0xc] %v1061_v10  ;;  %v1093_v12 = vpop.permute.xlu1 %1092  ;;  %v1661_v24 = vpack.c.bf16 %v1289_v13, %v1283_v5 }
 0x3c0   :  { %v1290_v17 = vld [vmem:[#allocation2 + $0x60] sm:$0xff] }
 0x3c1   :  { %v1091_v18 = vpop.permute.xlu0 %1090  ;;  %v1659_v19 = vpack.c.bf16 %v1290_v17, %v1284_v15 }
 0x3c2   :  { %v1097_v21 = vsel %vm63_vm5, %v2236_v37, %v1091_v18  ;;  %v1098_v23 = vsel %vm63_vm5, %v1091_v18, %v1093_v12 }
 0x3c3   :  { %1110 = vst [vmem:[#allocation2 + $0x28] sm:$0x30] %v1097_v21  ;;  %1111 = vst [vmem:[#allocation2 + $0x30] sm:$0x30] %v1098_v23  ;;  %1660 = vmatprep.subr.bf16.mxu1 %v1659_v19  ;;  %v1130_v22 = vpop.permute.xlu1 %1129 }
 0x3c4   :  { %1662 = vmatpush1.bf16.msra.mxu1 %v1661_v24 }
 0x3c5   :  { %v1128_v27 = vpop.permute.xlu0 %1127 }
 0x3c6   :  { %v1134_v1 = vsel %vm2377_vm2, %v2241_v44, %v1128_v27  ;;  %v1135_v25 = vsel %vm2380_vm9, %v1128_v27, %v1130_v22 }
 0x3c7   :  { %1147 = vst [vmem:[#allocation2 + $0x28] sm:$0xc0] %v1134_v1  ;;  %1148 = vst [vmem:[#allocation2 + $0x30] sm:$0xc0] %v1135_v25  ;;  %v1198_v28 = vpop.permute.xlu1 %1197 }
 0x3c8   :  { %v1203_v30 = vsel %vm105_vm8, %v1196_v57, %v1198_v28  ;;  %1217 = vst.msk [vmem:[#allocation2 + $0x70] sm:$0x30] %vm662_vm11, %v1198_v28 }
 0x3c9   :  { %1216 = vst [vmem:[#allocation2 + $0x68] sm:$0x30] %v1203_v30  ;;  %v1167_v31 = vpop.permute.xlu0 %1166 }
 0x3ca   :  { %v1172_v32 = vsel %vm93_vm10, %v1165_v53, %v1167_v31  ;;  %1186 = vst.msk [vmem:[#allocation2 + $0x70] sm:$0xc] %vm629_vm7, %v1167_v31  ;;  %v1545_v53 = vunpack.c.l.s4 %v1716_v52 }
 0x3cb   :  { %1185 = vst [vmem:[#allocation2 + $0x68] sm:$0xc] %v1172_v32  ;;  %v1258_v34 = vpop.permute.xlu1 %1257 }
 0x3cc   :  { %v1546_v54 = vunpack.c.0.s8 %v1545_v53 }
 0x3cd   :  { %v1229_v11 = vpop.permute.xlu0 %1228 }
 0x3ce   :  { %v1234_v33 = vsel %vm117_vm6, %v1227_v61, %v1229_v11  ;;  %1248 = vst.msk [vmem:[#allocation2 + $0x70] sm:$0xc0] %vm695_vm13, %v1229_v11  ;;  %v1286_v39 = vld [vmem:[#allocation2 + $0x30] sm:$0xff]  ;;  %v1285_v43 = vld [vmem:[#allocation2 + $0x28] sm:$0xff]  ;;  %v1549_v58 = vsub.s32 %v1546_v54, %v1947_v8 }
 0x3cf   :  { %1247 = vst [vmem:[#allocation2 + $0x68] sm:$0xc0] %v1234_v33 }
 0x3d1   :  { %v1256_v35 = vpop.permute.xlu0 %1255 }
 0x3d2   :  { %v1263_v36 = vsel %vm129_vm3, %v2227_v14, %v1256_v35  ;;  %v1264_v37 = vsel %vm129_vm3, %v1256_v35, %v1258_v34 }
 0x3d3   :  { %1276 = vst [vmem:[#allocation2 + $0x98] sm:$0x3] %v1263_v36  ;;  %1277 = vst [vmem:[#allocation2 + $0xa0] sm:$0x3] %v1264_v37 }
 0x3d5   :  { %v1260_v38 = vpop.permute.xlu0 %1259  ;;  %v1292_v40 = vld [vmem:[#allocation2 + $0x70] sm:$0xff] }
 0x3d6   :  { %v1265_v41 = vsel %vm129_vm3, %v1258_v34, %v1260_v38  ;;  %1279 = vst.msk [vmem:[#allocation2 + $0xb0] sm:$0x3] %vm728_vm14, %v1260_v38  ;;  %v1663_v42 = vpack.c.bf16 %v1292_v40, %v1286_v39  ;;  %v1291_v44 = vld [vmem:[#allocation2 + $0x68] sm:$0xff] }
 0x3d7   :  { %1278 = vst [vmem:[#allocation2 + $0xa8] sm:$0x3] %v1265_v41  ;;  %v1665_v16 = vpack.c.bf16 %v1291_v44, %v1285_v43 }
 0x3d8   :  { %1664 = vmatprep.subr.bf16.mxu0 %v1663_v42 }
 0x3d9   :  { %1666 = vmatpush1.bf16.msra.mxu0 %v1665_v16 }
 0x3da   :  { %v1296_v20 = vld [vmem:[#allocation2 + $0xa0] sm:$0x3]  ;;  %v1295_v14 = vld [vmem:[#allocation2 + $0x98] sm:$0x3] }
 0x3db   :  { %1619 = vmatprep.subr.msk.mxu1 %vm758_vm12, %v1296_v20 }
 0x3dc   :  { %1620 = vmatpush1.msk.msra.mxu1 %vm758_vm12, %v1295_v14 }
 0x3dd   :  { %1621 = vmatmul.mubr.msk.f32.vlgmr.msra.gmra.mrb[6].mxu1 %vm51_vm15, %v2250_v49  ;;  %v1298_v45 = vld [vmem:[#allocation2 + $0xb0] sm:$0x3] }
 0x3de   :  { %1622 = vmatprep.subr.msk.mxu0 %vm758_vm12, %v1298_v45  ;;  %v1297_v26 = vld [vmem:[#allocation2 + $0xa8] sm:$0x3] }
 0x3df   :  { %1623 = vmatpush1.msk.msra.mxu0 %vm758_vm12, %v1297_v26 }
 0x3e0   :  { %1624 = vmatmul.mubr.msk.f32.vlgmr.msra.gmra.mrb[8].mxu0 %vm51_vm15, %v2250_v49 }
 0x482   :  { %v1388_v46 = vpop.f32.mrb[6].mxu0 }
 0x483   :  { %v1389_v47 = vadd.f32 %v1388_v46, %v1300_v29  ;;  %v1390_v48 = vpop.f32.mrb[7].mxu0 }
 0x484   :  { %v1391_v50 = vadd.f32 %v1390_v48, %v1300_v29 }
 0x486   :  { %v1541_v51 = vcombine.low %v1389_v47, %v1391_v50 }
 0x488   :  { %v1550_v3 = vrot.slane %v1541_v51, %v1549_v58 }
 0x4b0   :  { %v1459_v55 = vpop.f32.mrb[6].mxu1 }
 0x4b1   :  { %v1460_v56 = vadd.f32 %v1459_v55, %v1300_v29  ;;  %v1461_v57 = vpop.f32.mrb[7].mxu1 }
 0x4b2   :  { %v1462_v59 = vadd.f32 %v1461_v57, %v1300_v29 }
 0x4b3   :  { %v1530_v60 = vpop.f32.mrb[8].mxu0 }
 0x4b4   :  { %v1542_v49 = vcombine.low %v1460_v56, %v1462_v59  ;;  %v1531_v61 = vadd.f32 %v1530_v60, %v1300_v29  ;;  %v1532_v62 = vpop.f32.mrb[9].mxu0 }
 0x4b5   :  { %v1533_v63 = vadd.f32 %v1532_v62, %v1300_v29 }
 0x4b6   :  { %v1557_v4 = vrot.slane %v1542_v49, %v1549_v58 }
 0x4b7   :  { %v1543_v7 = vcombine.low %v1531_v61, %v1533_v63 }
 0x4b8   :  { %v1565_v6 = vcombine.low %v1550_v3, %v1557_v4 }
 0x4b9   :  { %v1564_v9 = vrot.slane %v1543_v7, %v1549_v58 }
 0x4ba   :  { %v1572_v10 = vrot.slane %v1565_v6, %v1549_v58 }
 0x4bb   :  { %v1579_v12 = vrot.slane %v1564_v9, %v1549_v58 }
 0x4bd   :  { %v1580_v13 = vcombine.low %v1572_v10, %v1579_v12 }
 0x4bf   :  { %v1582_v15 = vadd.f32 %v1580_v13, %v1766_v0 }
 0x4c1   :  { %1583 = vst.msk [vmem:[#allocation4] sm:$0x3f] %vm1777_vm0, %v1582_v15 }
 0x4c2   :  { %1692 = shalt.err (!%p1689_p4)
}
 0x4c3   :  { %s1693_s26 = scalar_lea.hbm %s2318_s8, 96 }
 0x4c4   :  { %p1694_p5 = scmp.ne.s32.totalorder %s2318_s8, %s1693_s26  ;;  %p1697_p6 = scmp.lt.u32.totalorder %s1693_s26, %s2318_s8 }
 0x4c6   :  { %p1699_p7 = pnand %p1697_p6, %p1694_p5 }
 0x4c8   :  { %1702 = shalt.err (!%p1699_p7)
}
 0x4c9   :  { %1593 = dma.vmem_to_hbm [thread:$0]  %s1591_s22, 96, %s2318_s8, [#allocation5]  }
 0x4ca   :  { %1703 = dma.done.wait [#allocation5], 96  }
 0x4cb   :  { %1704 = vsyncadd [#allocation5], 4294967200 }
 0x4cc   :  { %1597 = vsyncpa [#allocation5], 1 }

</bundles_post_ra>
